<compile_context>
chip_gen: v7x
topology: tpu7x:2x2x1
jax: 0.10.0
libtpu: 0.0.40
codegen_flags: <defaults>
</compile_context>

<pallas_src>
import functools

import jax
import jax.numpy as jnp
from jax.experimental import pallas as pl
from jax.experimental.pallas import tpu as pltpu


# ----------------------------------------------------------------------------
# Kernel
# ----------------------------------------------------------------------------

def _rmsnorm_kernel(x_ref, w_ref, o_ref, *, eps):
    # x_ref: (tm, C)   w_ref: (1, C)   o_ref: (tm, C)
    x = x_ref[...].astype(jnp.float32)
    ms = jnp.mean(x * x, axis=-1, keepdims=True)
    # rsqrt goes to the EUP (transcendental) unit — no VALU divide on the
    # critical path.
    normed = x * jax.lax.rsqrt(ms + eps)
    # Multiply by the weight while still in f32, then cast once on store.
    o_ref[...] = (normed * w_ref[...].astype(jnp.float32)).astype(o_ref.dtype)


# ----------------------------------------------------------------------------
# Wrapper
# ----------------------------------------------------------------------------

def _pick_row_tile(m):
    """Largest row tile (multiple of 8) that evenly divides m; else full m."""
    for tm in (1024, 512, 256, 128, 64, 32, 16, 8):
        if m % tm == 0:
            return tm
    return m  # full extent is always a legal block shape


def rmsnorm_pallas(x, weight, eps=1e-6):
    """RMSNorm over the last dim of x. x: (..., C), weight: (C,)."""
    orig_shape = x.shape
    C = orig_shape[-1]
    x2d = x.reshape(-1, C)
    M = x2d.shape[0]
    tm = _pick_row_tile(M)
    grid = (M // tm,)

    out = pl.pallas_call(
        functools.partial(_rmsnorm_kernel, eps=eps),
        grid=grid,
        out_shape=jax.ShapeDtypeStruct((M, C), x.dtype),
        in_specs=[
            pl.BlockSpec((tm, C), lambda i: (i, 0)),   # row-tiled activations
            pl.BlockSpec((1, C), lambda i: (0, 0)),    # weight broadcast to all tiles
        ],
        out_specs=pl.BlockSpec((tm, C), lambda i: (i, 0)),
        compiler_params=pltpu.CompilerParams(
            dimension_semantics=("parallel",)          # pipelined + megacore-shardable
        ),
    )(x2d, weight.reshape(1, C))
    return out.reshape(orig_shape)


# ----------------------------------------------------------------------------
# Reference (pure JAX) for correctness check
# ----------------------------------------------------------------------------

def rmsnorm_ref(x, weight, eps=1e-6):
    xf = x.astype(jnp.float32)
    rms = jnp.sqrt(jnp.mean(xf * xf, axis=-1, keepdims=True) + eps)
    return ((xf / rms) * weight.astype(jnp.float32)).astype(x.dtype)


if __name__ == "__main__":
    key = jax.random.PRNGKey(0)
    kx, kw = jax.random.split(key)

    # Small but tiling-exercising shape: M = 4*128 = 512 rows (grid of 4 tiles
    # of 128 rows), C = 256 lanes (multiple of 128 -> lane-dense stores).
    B, T, C = 4, 128, 256
    x = jax.random.normal(kx, (B, T, C), jnp.float32)
    weight = 1.0 + 0.1 * jax.random.normal(kw, (C,), jnp.float32)

    out = rmsnorm_pallas(x, weight)
    jax.block_until_ready(out)

    ref = rmsnorm_ref(x, weight)
    assert out.shape == x.shape, out.shape
    assert out.dtype == x.dtype, out.dtype
    assert jnp.allclose(out, ref, atol=1e-5, rtol=1e-5), (
        float(jnp.max(jnp.abs(out - ref)))
    )
    print("KERNEL_OK")
</pallas_src>

<mosaic_0001>
module attributes {stable_mosaic.version = 11 : i64} {
  func.func @_rmsnorm_kernel(%arg0: i32, %arg1: memref<512x256xf32, #tpu.memory_space<vmem>>, %arg2: memref<1x256xf32, #tpu.memory_space<vmem>>, %arg3: memref<512x256xf32, #tpu.memory_space<vmem>>) attributes {dimension_semantics = [#tpu.dimension_semantics<parallel>], iteration_bounds = array<i64: 1>, scalar_prefetch = 0 : i64, scratch_operands = 0 : i64, tpu.core_type = #tpu.core_type<tc>, window_params = [{transform_indices = @transform_0, window_bounds = array<i64: 512, 256>}, {pipeline_mode = #tpu.pipeline_mode<synchronous>, transform_indices = @transform_1, window_bounds = array<i64: 1, 256>}, {transform_indices = @transform_2, window_bounds = array<i64: 512, 256>}]} {
    %c0 = arith.constant 0 : index
    %c0_0 = arith.constant 0 : index
    %0 = vector.load %arg1[%c0, %c0_0] : memref<512x256xf32, #tpu.memory_space<vmem>>, vector<512x256xf32>
    %1 = arith.mulf %0, %0 : vector<512x256xf32>
    %cst = arith.constant dense<0.000000e+00> : vector<512xf32>
    %2 = vector.multi_reduction <add>, %1, %cst [1] : vector<512x256xf32> to vector<512xf32>
    %3 = vector.shape_cast %2 : vector<512xf32> to vector<512x1xf32>
    %cst_1 = arith.constant 2.560000e+02 : f32
    %4 = vector.broadcast %cst_1 : f32 to vector<512x1xf32>
    %5 = arith.divf %3, %4 : vector<512x1xf32>
    %cst_2 = arith.constant 9.99999997E-7 : f32
    %6 = vector.broadcast %cst_2 : f32 to vector<512x1xf32>
    %7 = arith.addf %5, %6 : vector<512x1xf32>
    %8 = math.rsqrt %7 : vector<512x1xf32>
    %9 = vector.broadcast %8 : vector<512x1xf32> to vector<512x256xf32>
    %10 = arith.mulf %0, %9 : vector<512x256xf32>
    %c0_3 = arith.constant 0 : index
    %c0_4 = arith.constant 0 : index
    %11 = vector.load %arg2[%c0_3, %c0_4] : memref<1x256xf32, #tpu.memory_space<vmem>>, vector<1x256xf32>
    %12 = vector.broadcast %11 : vector<1x256xf32> to vector<512x256xf32>
    %13 = arith.mulf %10, %12 : vector<512x256xf32>
    %c0_5 = arith.constant 0 : index
    %c0_6 = arith.constant 0 : index
    %14 = vector.load %arg3[%c0_5, %c0_6] : memref<512x256xf32, #tpu.memory_space<vmem>>, vector<512x256xf32>
    tpu.vector_store %arg3[%c0_5, %c0_6], %13 {strides = array<i32>} : memref<512x256xf32, #tpu.memory_space<vmem>>, vector<512x256xf32>,
    return
  }
  func.func @transform_0(%arg0: i32) -> (i32, i32) {
    %c0_i32 = arith.constant 0 : i32
    %c0_i32_0 = arith.constant 0 : i32
    return %arg0, %c0_i32 : i32, i32
  }
  func.func @transform_1(%arg0: i32) -> (i32, i32) {
    %c0_i32 = arith.constant 0 : i32
    %c0_i32_0 = arith.constant 0 : i32
    %c0_i32_1 = arith.constant 0 : i32
    return %c0_i32, %c0_i32_0 : i32, i32
  }
  func.func @transform_2(%arg0: i32) -> (i32, i32) {
    %c0_i32 = arith.constant 0 : i32
    %c0_i32_0 = arith.constant 0 : i32
    return %arg0, %c0_i32 : i32, i32
  }
}

</mosaic_0001>

<bundles_post_ra>
// kernel: tpu_custom_call.1
= control target key start
LH: loop header
LB: loop body
LE: loop exit
PB: predicated region body
PF: predicated region fallthrough
CT: control target
= control target key end

     0   :  { %7 = vsyncpa [#allocation3], 0  ;;  %s1716_s0 = inlined_call_operand.hbm [shape: f32[512,256], index: 0, kind: input, shape index: {}]   ;;  %s1717_s1 = inlined_call_operand.vmem [shape: f32[1,256], index: 1, kind: input, shape index: {}]   ;;  %s1718_s2 = inlined_call_operand.hbm [shape: f32[512,256], index: 2, kind: output, shape index: {}]  }
   0x1   :  { %8 = vsyncpa [#allocation4], 0  ;;  %s1352_s9 = smov [#allocation2]   ;;  %s1304_s13 = scalar_lea.hbm %s1716_s0, 16384 }
   0x2   :  { %s14_s10 = sshll.u32 %s1352_s9, 4  ;;  %p1305_p0 = scmp.ne.s32.totalorder %s1716_s0, %s1304_s13  ;;  %s15_s10 = int_to_ptr.vmem [resolvable:$true] %s14_s10 }
   0x3   :  { %p1308_p1 = scmp.lt.u32.totalorder %s1304_s13, %s1716_s0 }
   0x5   :  { %p1310_p2 = pnand %p1308_p1, %p1305_p0 }
   0x7   :  { %1313 = shalt.err (!%p1310_p2)
}
   0x8   :  { %s1314_s18 = scalar_lea.vmem %s15_s10, 16384  ;;  %p1319_p4 = scmp.lt.s32.totalorder %s15_s10, %s15_s10 }
   0x9   :  { %p1315_p3 = scmp.ne.s32.totalorder %s15_s10, %s1314_s18  ;;  %p1320_p5 = scmp.lt.s32.totalorder %s1314_s18, %s1314_s18 }
   0xb   :  { %p1321_p6 = por %p1320_p5, %p1319_p4 }
   0xd   :  { %p1322_p7 = pnand %p1321_p6, %p1315_p3 }
   0xf   :  { %1325 = shalt.err (!%p1322_p7)
}
  0x10   :  { %s1353_s19 = smov 256   ;;  %s1354_s20 = smov 16  }
  0x11   :  { %20 = dma.hbm_to_vmem [thread:$0]  %s1716_s0, 16384, %s15_s10, [#allocation3], %s1353_s19, %s1353_s19, %s1354_s20  }
  0x12   :  { %1348 = dma.done.wait [#allocation3], 16384  }
  0x13   :  { %1349 = vsyncadd [#allocation3], 4294950912  ;;  %v1386_v0 = vld [vmem:[#allocation2 + $0x20] sm:$0xff]  ;;  %v1388_v1 = vld [vmem:[#allocation2 + $0x28] sm:$0xff] }
  0x14   :  { %v1390_v2 = vld [vmem:[#allocation2] sm:$0xff]  ;;  %v158_v3 = vmul.f32 %v1386_v0, %v1386_v0  ;;  %v159_v4 = vmul.f32 %v1388_v1, %v1388_v1  ;;  %v1396_v5 = vld [vmem:[#allocation2 + $0x8] sm:$0xff]  ;;  %v1400_v7 = vld [vmem:[#allocation2 + $0x30] sm:$0xff] }
  0x15   :  { %v154_v6 = vmul.f32 %v1390_v2, %v1390_v2  ;;  %v1402_v8 = vld [vmem:[#allocation2 + $0x38] sm:$0xff]  ;;  %v155_v9 = vmul.f32 %v1396_v5, %v1396_v5  ;;  %v160_v10 = vmul.f32 %v1400_v7, %v1400_v7  ;;  %v1410_v12 = vld [vmem:[#allocation2 + $0x10] sm:$0xff]  ;;  %v1422_v19 = vld [vmem:[#allocation2 + $0x40] sm:$0xff] }
  0x16   :  { %v161_v11 = vmul.f32 %v1402_v8, %v1402_v8  ;;  %v1412_v13 = vld [vmem:[#allocation2 + $0x18] sm:$0xff]  ;;  %v1414_v14 = vld [vmem:[#allocation2 + $0x50] sm:$0xff]  ;;  %v288_v15 = vadd.f32 %v159_v4, %v158_v3  ;;  %v156_v16 = vmul.f32 %v1410_v12, %v1410_v12  ;;  %v1424_v20 = vld [vmem:[#allocation2 + $0x48] sm:$0xff]  ;;  %v162_v26 = vmul.f32 %v1422_v19, %v1422_v19 }
  0x17   :  { %v157_v17 = vmul.f32 %v1412_v13, %v1412_v13  ;;  %v1420_v18 = vld [vmem:[#allocation2 + $0x58] sm:$0xff]  ;;  %v282_v21 = vadd.f32 %v155_v9, %v154_v6  ;;  %v164_v23 = vmul.f32 %v1414_v14, %v1414_v14  ;;  %v163_v27 = vmul.f32 %v1424_v20, %v1424_v20  ;;  %v1434_v28 = vld [vmem:[#allocation2 + $0x70] sm:$0xff]  ;;  %v1438_v30 = vld [vmem:[#allocation2 + $0x60] sm:$0xff] }
  0x18   :  { %289 = vadd.xlane.f32.xlu1 %v288_v15  ;;  %v291_v22 = vadd.f32 %v161_v11, %v160_v10  ;;  %v165_v24 = vmul.f32 %v1420_v18, %v1420_v18  ;;  %v1436_v29 = vld [vmem:[#allocation2 + $0x78] sm:$0xff]  ;;  %v1440_v31 = vld [vmem:[#allocation2 + $0x68] sm:$0xff]  ;;  %v168_v33 = vmul.f32 %v1434_v28, %v1434_v28  ;;  %v166_v36 = vmul.f32 %v1438_v30, %v1438_v30  ;;  %v1450_v38 = vld [vmem:[#allocation2 + $0x90] sm:$0xff] }
  0x19   :  { %283 = vadd.xlane.f32.xlu0 %v282_v21  ;;  %v285_v25 = vadd.f32 %v157_v17, %v156_v16  ;;  %v169_v34 = vmul.f32 %v1436_v29, %v1436_v29  ;;  %v294_v35 = vadd.f32 %v163_v27, %v162_v26  ;;  %v167_v37 = vmul.f32 %v1440_v31, %v1440_v31  ;;  %v1452_v39 = vld [vmem:[#allocation2 + $0x98] sm:$0xff]  ;;  %v1454_v40 = vld [vmem:[#allocation2 + $0x80] sm:$0xff]  ;;  %v1456_v41 = vld [vmem:[#allocation2 + $0x88] sm:$0xff] }
  0x1a   :  { %v297_v32 = vadd.f32 %v165_v24, %v164_v23  ;;  %v172_v43 = vmul.f32 %v1450_v38, %v1450_v38  ;;  %v173_v44 = vmul.f32 %v1452_v39, %v1452_v39  ;;  %v170_v46 = vmul.f32 %v1454_v40, %v1454_v40  ;;  %v1466_v48 = vld [vmem:[#allocation2 + $0xb0] sm:$0xff]  ;;  %v1468_v49 = vld [vmem:[#allocation2 + $0xb8] sm:$0xff]  ;;  %v1470_v50 = vld [vmem:[#allocation2 + $0xa0] sm:$0xff] }
  0x1b   :  { %v303_v42 = vadd.f32 %v169_v34, %v168_v33  ;;  %v300_v45 = vadd.f32 %v167_v37, %v166_v36  ;;  %v171_v47 = vmul.f32 %v1456_v41, %v1456_v41  ;;  %v1472_v51 = vld [vmem:[#allocation2 + $0xa8] sm:$0xff]  ;;  %v176_v53 = vmul.f32 %v1466_v48, %v1466_v48  ;;  %v1482_v58 = vld [vmem:[#allocation2 + $0xd0] sm:$0xff]  ;;  %v1484_v59 = vld [vmem:[#allocation2 + $0xd8] sm:$0xff] }
  0x1c   :  { %292 = vadd.xlane.f32.xlu1 %v291_v22  ;;  %v309_v52 = vadd.f32 %v173_v44, %v172_v43  ;;  %v177_v54 = vmul.f32 %v1468_v49, %v1468_v49  ;;  %v174_v56 = vmul.f32 %v1470_v50, %v1470_v50  ;;  %v175_v57 = vmul.f32 %v1472_v51, %v1472_v51  ;;  %v1486_v60 = vld [vmem:[#allocation2 + $0xc0] sm:$0xff]  ;;  %v1488_v61 = vld [vmem:[#allocation2 + $0xc8] sm:$0xff]  ;;  %v1498_v10 = vld [vmem:[#allocation2 + $0xf0] sm:$0xff] }
  0x1d   :  { %286 = vadd.xlane.f32.xlu0 %v285_v25  ;;  %v306_v55 = vadd.f32 %v171_v47, %v170_v46  ;;  %v180_v63 = vmul.f32 %v1482_v58, %v1482_v58  ;;  %v181_v3 = vmul.f32 %v1484_v59, %v1484_v59  ;;  %v178_v6 = vmul.f32 %v1486_v60, %v1486_v60  ;;  %v1500_v11 = vld [vmem:[#allocation2 + $0xf8] sm:$0xff]  ;;  %v1502_v15 = vld [vmem:[#allocation2 + $0xe0] sm:$0xff]  ;;  %v1504_v16 = vld [vmem:[#allocation2 + $0xe8] sm:$0xff] }
  0x1e   :  { %v315_v62 = vadd.f32 %v177_v54, %v176_v53  ;;  %v312_v4 = vadd.f32 %v175_v57, %v174_v56  ;;  %v179_v9 = vmul.f32 %v1488_v61, %v1488_v61  ;;  %v184_v21 = vmul.f32 %v1498_v10, %v1498_v10  ;;  %v1514_v26 = vld [vmem:[#allocation2 + $0x110] sm:$0xff]  ;;  %v1516_v27 = vld [vmem:[#allocation2 + $0x118] sm:$0xff]  ;;  %v1520_v33 = vld [vmem:[#allocation2 + $0x108] sm:$0xff] }
  0x1f   :  { %v321_v17 = vadd.f32 %v181_v3, %v180_v63  ;;  %v185_v22 = vmul.f32 %v1500_v11, %v1500_v11  ;;  %v182_v24 = vmul.f32 %v1502_v15, %v1502_v15  ;;  %v183_v25 = vmul.f32 %v1504_v16, %v1504_v16  ;;  %v64_v44 = vld [vmem:[#allocation2 + $0x130] sm:$0xff]  ;;  %v62_v46 = vld [vmem:[#allocation2 + $0x120] sm:$0xff]  ;;  %v63_v47 = vld [vmem:[#allocation2 + $0x128] sm:$0xff] }
  0x20   :  { %298 = vadd.xlane.f32.xlu1 %v297_v32  ;;  %v318_v23 = vadd.f32 %v179_v9, %v178_v6  ;;  %v1518_v32 = vld [vmem:[#allocation2 + $0x100] sm:$0xff]  ;;  %v189_v36 = vmul.f32 %v1516_v27, %v1516_v27  ;;  %v187_v43 = vmul.f32 %v1520_v33, %v1520_v33  ;;  %v192_v53 = vmul.f32 %v64_v44, %v64_v44  ;;  %v69_v63 = vld [vmem:[#allocation2 + $0x158] sm:$0xff] }
  0x21   :  { %295 = vadd.xlane.f32.xlu0 %v294_v35  ;;  %v327_v34 = vadd.f32 %v185_v22, %v184_v21  ;;  %v188_v35 = vmul.f32 %v1514_v26, %v1514_v26  ;;  %v324_v37 = vadd.f32 %v183_v25, %v182_v24  ;;  %v190_v56 = vmul.f32 %v62_v46, %v62_v46  ;;  %v66_v3 = vld [vmem:[#allocation2 + $0x140] sm:$0xff]  ;;  %v72_v24 = vld [vmem:[#allocation2 + $0x170] sm:$0xff]  ;;  %v73_v25 = vld [vmem:[#allocation2 + $0x178] sm:$0xff] }
  0x22   :  { %v191_v57 = vmul.f32 %v63_v47, %v63_v47  ;;  %v194_v22 = vmul.f32 %v66_v3, %v66_v3  ;;  %v76_v46 = vld [vmem:[#allocation2 + $0x190] sm:$0xff]  ;;  %v77_v47 = vld [vmem:[#allocation2 + $0x198] sm:$0xff] }
  0x23   :  { %v80_v3 = vld [vmem:[#allocation2 + $0x1b0] sm:$0xff] }
  0x24   :  { %304 = vadd.xlane.f32.xlu1 %v303_v42  ;;  %v186_v42 = vmul.f32 %v1518_v32, %v1518_v32  ;;  %v336_v21 = vadd.f32 %v191_v57, %v190_v56  ;;  %v205_v56 = vmul.f32 %v77_v47, %v77_v47 }
  0x25   :  { %301 = vadd.xlane.f32.xlu0 %v300_v45  ;;  %v65_v45 = vld [vmem:[#allocation2 + $0x138] sm:$0xff] }
  0x26   :  { %v193_v54 = vmul.f32 %v65_v45, %v65_v45 }
  0x28   :  { %310 = vadd.xlane.f32.xlu1 %v309_v52  ;;  %v333_v52 = vadd.f32 %v189_v36, %v188_v35  ;;  %v339_v6 = vadd.f32 %v193_v54, %v192_v53  ;;  %v71_v35 = vld [vmem:[#allocation2 + $0x168] sm:$0xff] }
  0x29   :  { %307 = vadd.xlane.f32.xlu0 %v306_v55  ;;  %v330_v55 = vadd.f32 %v187_v43, %v186_v42  ;;  %v201_v42 = vmul.f32 %v73_v25, %v73_v25  ;;  %v199_v45 = vmul.f32 %v71_v35, %v71_v35  ;;  %v75_v53 = vld [vmem:[#allocation2 + $0x188] sm:$0xff]  ;;  %v85_v35 = vld [vmem:[#allocation2 + $0x1d8] sm:$0xff] }
  0x2c   :  { %316 = vadd.xlane.f32.xlu1 %v315_v62  ;;  %v68_v62 = vld [vmem:[#allocation2 + $0x150] sm:$0xff] }
  0x2d   :  { %313 = vadd.xlane.f32.xlu0 %v312_v4  ;;  %v67_v4 = vld [vmem:[#allocation2 + $0x148] sm:$0xff]  ;;  %v196_v9 = vmul.f32 %v68_v62, %v68_v62 }
  0x30   :  { %322 = vadd.xlane.f32.xlu1 %v321_v17  ;;  %v197_v17 = vmul.f32 %v69_v63, %v69_v63  ;;  %v203_v63 = vmul.f32 %v75_v53, %v75_v53  ;;  %v89_v53 = vld [vmem:[#allocation2 + $0x1f8] sm:$0xff] }
  0x31   :  { %319 = vadd.xlane.f32.xlu0 %v318_v23  ;;  %v195_v23 = vmul.f32 %v67_v4, %v67_v4  ;;  %v81_v4 = vld [vmem:[#allocation2 + $0x1b8] sm:$0xff] }
  0x32   :  { %v345_v36 = vadd.f32 %v197_v17, %v196_v9  ;;  %v79_v9 = vld [vmem:[#allocation2 + $0x1a8] sm:$0xff] }
  0x33   :  { %v342_v43 = vadd.f32 %v195_v23, %v194_v22  ;;  %v209_v22 = vmul.f32 %v81_v4, %v81_v4  ;;  %v207_v25 = vmul.f32 %v79_v9, %v79_v9  ;;  %v93_v9 = vld [vmem:[#allocation2 + $0x218] sm:$0xff] }
  0x34   :  { %328 = vadd.xlane.f32.xlu1 %v327_v34  ;;  %v70_v34 = vld [vmem:[#allocation2 + $0x160] sm:$0xff] }
  0x35   :  { %325 = vadd.xlane.f32.xlu0 %v324_v37  ;;  %v200_v37 = vmul.f32 %v72_v24, %v72_v24  ;;  %v198_v44 = vmul.f32 %v70_v34, %v70_v34  ;;  %v84_v34 = vld [vmem:[#allocation2 + $0x1d0] sm:$0xff] }
  0x37   :  { %v351_v54 = vadd.f32 %v201_v42, %v200_v37  ;;  %v348_v57 = vadd.f32 %v199_v45, %v198_v44  ;;  %v83_v37 = vld [vmem:[#allocation2 + $0x1c8] sm:$0xff]  ;;  %v213_v44 = vmul.f32 %v85_v35, %v85_v35 }
  0x38   :  { %334 = vadd.xlane.f32.xlu1 %v333_v52  ;;  %v74_v52 = vld [vmem:[#allocation2 + $0x180] sm:$0xff]  ;;  %v211_v47 = vmul.f32 %v83_v37, %v83_v37  ;;  %v97_v37 = vld [vmem:[#allocation2 + $0x238] sm:$0xff] }
  0x39   :  { %331 = vadd.xlane.f32.xlu0 %v330_v55  ;;  %v204_v55 = vmul.f32 %v76_v46, %v76_v46  ;;  %v202_v62 = vmul.f32 %v74_v52, %v74_v52  ;;  %v88_v52 = vld [vmem:[#allocation2 + $0x1f0] sm:$0xff] }
  0x3b   :  { %v357_v17 = vadd.f32 %v205_v56, %v204_v55  ;;  %v354_v23 = vadd.f32 %v203_v63, %v202_v62  ;;  %v87_v55 = vld [vmem:[#allocation2 + $0x1e8] sm:$0xff]  ;;  %v217_v62 = vmul.f32 %v89_v53, %v89_v53 }
  0x3c   :  { %340 = vadd.xlane.f32.xlu1 %v339_v6  ;;  %v78_v6 = vld [vmem:[#allocation2 + $0x1a0] sm:$0xff]  ;;  %v215_v4 = vmul.f32 %v87_v55, %v87_v55  ;;  %v101_v55 = vld [vmem:[#allocation2 + $0x258] sm:$0xff] }
  0x3d   :  { %337 = vadd.xlane.f32.xlu0 %v336_v21  ;;  %v208_v21 = vmul.f32 %v80_v3, %v80_v3  ;;  %v206_v24 = vmul.f32 %v78_v6, %v78_v6  ;;  %v92_v6 = vld [vmem:[#allocation2 + $0x210] sm:$0xff] }
  0x3f   :  { %v363_v42 = vadd.f32 %v209_v22, %v208_v21  ;;  %v360_v45 = vadd.f32 %v207_v25, %v206_v24  ;;  %v91_v21 = vld [vmem:[#allocation2 + $0x208] sm:$0xff]  ;;  %v221_v24 = vmul.f32 %v93_v9, %v93_v9 }
  0x40   :  { %346 = vadd.xlane.f32.xlu1 %v345_v36  ;;  %v82_v36 = vld [vmem:[#allocation2 + $0x1c0] sm:$0xff]  ;;  %v219_v35 = vmul.f32 %v91_v21, %v91_v21  ;;  %v105_v21 = vld [vmem:[#allocation2 + $0x278] sm:$0xff] }
  0x41   :  { %343 = vadd.xlane.f32.xlu0 %v342_v43  ;;  %v212_v43 = vmul.f32 %v84_v34, %v84_v34  ;;  %v210_v46 = vmul.f32 %v82_v36, %v82_v36  ;;  %v96_v36 = vld [vmem:[#allocation2 + $0x230] sm:$0xff] }
  0x43   :  { %v369_v56 = vadd.f32 %v213_v44, %v212_v43  ;;  %v366_v63 = vadd.f32 %v211_v47, %v210_v46  ;;  %v95_v43 = vld [vmem:[#allocation2 + $0x228] sm:$0xff]  ;;  %v225_v46 = vmul.f32 %v97_v37, %v97_v37 }
  0x44   :  { %352 = vadd.xlane.f32.xlu1 %v351_v54  ;;  %v86_v54 = vld [vmem:[#allocation2 + $0x1e0] sm:$0xff]  ;;  %v223_v53 = vmul.f32 %v95_v43, %v95_v43  ;;  %v109_v43 = vld [vmem:[#allocation2 + $0x298] sm:$0xff] }
  0x45   :  { %349 = vadd.xlane.f32.xlu0 %v348_v57  ;;  %v216_v57 = vmul.f32 %v88_v52, %v88_v52  ;;  %v214_v3 = vmul.f32 %v86_v54, %v86_v54  ;;  %v100_v54 = vld [vmem:[#allocation2 + $0x250] sm:$0xff] }
  0x47   :  { %v375_v22 = vadd.f32 %v217_v62, %v216_v57  ;;  %v372_v25 = vadd.f32 %v215_v4, %v214_v3  ;;  %v99_v57 = vld [vmem:[#allocation2 + $0x248] sm:$0xff]  ;;  %v229_v3 = vmul.f32 %v101_v55, %v101_v55 }
  0x48   :  { %358 = vadd.xlane.f32.xlu1 %v357_v17  ;;  %v90_v17 = vld [vmem:[#allocation2 + $0x200] sm:$0xff]  ;;  %v227_v9 = vmul.f32 %v99_v57, %v99_v57  ;;  %v113_v57 = vld [vmem:[#allocation2 + $0x2b8] sm:$0xff] }
  0x49   :  { %355 = vadd.xlane.f32.xlu0 %v354_v23  ;;  %v220_v23 = vmul.f32 %v92_v6, %v92_v6  ;;  %v218_v34 = vmul.f32 %v90_v17, %v90_v17  ;;  %v104_v17 = vld [vmem:[#allocation2 + $0x270] sm:$0xff] }
  0x4b   :  { %v381_v44 = vadd.f32 %v221_v24, %v220_v23  ;;  %v378_v47 = vadd.f32 %v219_v35, %v218_v34  ;;  %v103_v23 = vld [vmem:[#allocation2 + $0x268] sm:$0xff]  ;;  %v233_v34 = vmul.f32 %v105_v21, %v105_v21 }
  0x4c   :  { %364 = vadd.xlane.f32.xlu1 %v363_v42  ;;  %v94_v42 = vld [vmem:[#allocation2 + $0x220] sm:$0xff]  ;;  %v231_v37 = vmul.f32 %v103_v23, %v103_v23  ;;  %v117_v23 = vld [vmem:[#allocation2 + $0x2d8] sm:$0xff] }
  0x4d   :  { %361 = vadd.xlane.f32.xlu0 %v360_v45  ;;  %v224_v45 = vmul.f32 %v96_v36, %v96_v36  ;;  %v222_v52 = vmul.f32 %v94_v42, %v94_v42  ;;  %v108_v42 = vld [vmem:[#allocation2 + $0x290] sm:$0xff] }
  0x4f   :  { %v387_v62 = vadd.f32 %v225_v46, %v224_v45  ;;  %v384_v4 = vadd.f32 %v223_v53, %v222_v52  ;;  %v107_v45 = vld [vmem:[#allocation2 + $0x288] sm:$0xff]  ;;  %v237_v52 = vmul.f32 %v109_v43, %v109_v43 }
  0x50   :  { %370 = vadd.xlane.f32.xlu1 %v369_v56  ;;  %v98_v56 = vld [vmem:[#allocation2 + $0x240] sm:$0xff]  ;;  %v235_v55 = vmul.f32 %v107_v45, %v107_v45  ;;  %v121_v45 = vld [vmem:[#allocation2 + $0x2f8] sm:$0xff] }
  0x51   :  { %367 = vadd.xlane.f32.xlu0 %v366_v63  ;;  %v228_v63 = vmul.f32 %v100_v54, %v100_v54  ;;  %v226_v6 = vmul.f32 %v98_v56, %v98_v56  ;;  %v112_v56 = vld [vmem:[#allocation2 + $0x2b0] sm:$0xff] }
  0x53   :  { %v393_v24 = vadd.f32 %v229_v3, %v228_v63  ;;  %v390_v35 = vadd.f32 %v227_v9, %v226_v6  ;;  %v111_v63 = vld [vmem:[#allocation2 + $0x2a8] sm:$0xff]  ;;  %v241_v6 = vmul.f32 %v113_v57, %v113_v57 }
  0x54   :  { %376 = vadd.xlane.f32.xlu1 %v375_v22  ;;  %v102_v22 = vld [vmem:[#allocation2 + $0x260] sm:$0xff]  ;;  %v239_v21 = vmul.f32 %v111_v63, %v111_v63  ;;  %v125_v63 = vld [vmem:[#allocation2 + $0x318] sm:$0xff] }
  0x55   :  { %373 = vadd.xlane.f32.xlu0 %v372_v25  ;;  %v232_v25 = vmul.f32 %v104_v17, %v104_v17  ;;  %v230_v36 = vmul.f32 %v102_v22, %v102_v22  ;;  %v116_v22 = vld [vmem:[#allocation2 + $0x2d0] sm:$0xff] }
  0x57   :  { %v399_v46 = vadd.f32 %v233_v34, %v232_v25  ;;  %v396_v53 = vadd.f32 %v231_v37, %v230_v36  ;;  %v115_v25 = vld [vmem:[#allocation2 + $0x2c8] sm:$0xff]  ;;  %v245_v36 = vmul.f32 %v117_v23, %v117_v23 }
  0x58   :  { %382 = vadd.xlane.f32.xlu1 %v381_v44  ;;  %v106_v44 = vld [vmem:[#allocation2 + $0x280] sm:$0xff]  ;;  %v243_v43 = vmul.f32 %v115_v25, %v115_v25  ;;  %v129_v25 = vld [vmem:[#allocation2 + $0x338] sm:$0xff] }
  0x59   :  { %379 = vadd.xlane.f32.xlu0 %v378_v47  ;;  %v236_v47 = vmul.f32 %v108_v42, %v108_v42  ;;  %v234_v54 = vmul.f32 %v106_v44, %v106_v44  ;;  %v120_v44 = vld [vmem:[#allocation2 + $0x2f0] sm:$0xff] }
  0x5b   :  { %v405_v3 = vadd.f32 %v237_v52, %v236_v47  ;;  %v402_v9 = vadd.f32 %v235_v55, %v234_v54  ;;  %v119_v47 = vld [vmem:[#allocation2 + $0x2e8] sm:$0xff]  ;;  %v249_v54 = vmul.f32 %v121_v45, %v121_v45 }
  0x5c   :  { %388 = vadd.xlane.f32.xlu1 %v387_v62  ;;  %v110_v62 = vld [vmem:[#allocation2 + $0x2a0] sm:$0xff]  ;;  %v247_v57 = vmul.f32 %v119_v47, %v119_v47  ;;  %v133_v47 = vld [vmem:[#allocation2 + $0x358] sm:$0xff] }
  0x5d   :  { %385 = vadd.xlane.f32.xlu0 %v384_v4  ;;  %v240_v4 = vmul.f32 %v112_v56, %v112_v56  ;;  %v238_v17 = vmul.f32 %v110_v62, %v110_v62  ;;  %v124_v62 = vld [vmem:[#allocation2 + $0x310] sm:$0xff] }
  0x5f   :  { %v411_v34 = vadd.f32 %v241_v6, %v240_v4  ;;  %v408_v37 = vadd.f32 %v239_v21, %v238_v17  ;;  %v123_v4 = vld [vmem:[#allocation2 + $0x308] sm:$0xff]  ;;  %v253_v17 = vmul.f32 %v125_v63, %v125_v63 }
  0x60   :  { %394 = vadd.xlane.f32.xlu1 %v393_v24  ;;  %v114_v24 = vld [vmem:[#allocation2 + $0x2c0] sm:$0xff]  ;;  %v251_v23 = vmul.f32 %v123_v4, %v123_v4  ;;  %v137_v4 = vld [vmem:[#allocation2 + $0x378] sm:$0xff] }
  0x61   :  { %391 = vadd.xlane.f32.xlu0 %v390_v35  ;;  %v244_v35 = vmul.f32 %v116_v22, %v116_v22  ;;  %v242_v42 = vmul.f32 %v114_v24, %v114_v24  ;;  %v128_v24 = vld [vmem:[#allocation2 + $0x330] sm:$0xff] }
  0x63   :  { %v417_v52 = vadd.f32 %v245_v36, %v244_v35  ;;  %v414_v55 = vadd.f32 %v243_v43, %v242_v42  ;;  %v127_v35 = vld [vmem:[#allocation2 + $0x328] sm:$0xff]  ;;  %v257_v42 = vmul.f32 %v129_v25, %v129_v25 }
  0x64   :  { %400 = vadd.xlane.f32.xlu1 %v399_v46  ;;  %v118_v46 = vld [vmem:[#allocation2 + $0x2e0] sm:$0xff]  ;;  %v255_v45 = vmul.f32 %v127_v35, %v127_v35  ;;  %v141_v35 = vld [vmem:[#allocation2 + $0x398] sm:$0xff] }
  0x65   :  { %397 = vadd.xlane.f32.xlu0 %v396_v53  ;;  %v248_v53 = vmul.f32 %v120_v44, %v120_v44  ;;  %v246_v56 = vmul.f32 %v118_v46, %v118_v46  ;;  %v132_v46 = vld [vmem:[#allocation2 + $0x350] sm:$0xff] }
  0x67   :  { %v423_v6 = vadd.f32 %v249_v54, %v248_v53  ;;  %v420_v21 = vadd.f32 %v247_v57, %v246_v56  ;;  %v131_v53 = vld [vmem:[#allocation2 + $0x348] sm:$0xff]  ;;  %v261_v56 = vmul.f32 %v133_v47, %v133_v47 }
  0x68   :  { %406 = vadd.xlane.f32.xlu1 %v405_v3  ;;  %v122_v3 = vld [vmem:[#allocation2 + $0x300] sm:$0xff]  ;;  %v259_v63 = vmul.f32 %v131_v53, %v131_v53  ;;  %v145_v53 = vld [vmem:[#allocation2 + $0x3b8] sm:$0xff] }
  0x69   :  { %403 = vadd.xlane.f32.xlu0 %v402_v9  ;;  %v252_v9 = vmul.f32 %v124_v62, %v124_v62  ;;  %v250_v22 = vmul.f32 %v122_v3, %v122_v3  ;;  %v136_v3 = vld [vmem:[#allocation2 + $0x370] sm:$0xff] }
  0x6b   :  { %v429_v36 = vadd.f32 %v253_v17, %v252_v9  ;;  %v426_v43 = vadd.f32 %v251_v23, %v250_v22  ;;  %v135_v9 = vld [vmem:[#allocation2 + $0x368] sm:$0xff]  ;;  %v265_v22 = vmul.f32 %v137_v4, %v137_v4 }
  0x6c   :  { %412 = vadd.xlane.f32.xlu1 %v411_v34  ;;  %v126_v34 = vld [vmem:[#allocation2 + $0x320] sm:$0xff]  ;;  %v263_v25 = vmul.f32 %v135_v9, %v135_v9  ;;  %v149_v9 = vld [vmem:[#allocation2 + $0x3d8] sm:$0xff] }
  0x6d   :  { %409 = vadd.xlane.f32.xlu0 %v408_v37  ;;  %v256_v37 = vmul.f32 %v128_v24, %v128_v24  ;;  %v254_v44 = vmul.f32 %v126_v34, %v126_v34  ;;  %v140_v34 = vld [vmem:[#allocation2 + $0x390] sm:$0xff] }
  0x6f   :  { %v435_v54 = vadd.f32 %v257_v42, %v256_v37  ;;  %v432_v57 = vadd.f32 %v255_v45, %v254_v44  ;;  %v139_v37 = vld [vmem:[#allocation2 + $0x388] sm:$0xff]  ;;  %v269_v44 = vmul.f32 %v141_v35, %v141_v35 }
  0x70   :  { %418 = vadd.xlane.f32.xlu1 %v417_v52  ;;  %v130_v52 = vld [vmem:[#allocation2 + $0x340] sm:$0xff]  ;;  %v267_v47 = vmul.f32 %v139_v37, %v139_v37  ;;  %v153_v37 = vld [vmem:[#allocation2 + $0x3f8] sm:$0xff] }
  0x71   :  { %415 = vadd.xlane.f32.xlu0 %v414_v55  ;;  %v260_v55 = vmul.f32 %v132_v46, %v132_v46  ;;  %v258_v62 = vmul.f32 %v130_v52, %v130_v52  ;;  %v144_v52 = vld [vmem:[#allocation2 + $0x3b0] sm:$0xff] }
  0x73   :  { %v441_v17 = vadd.f32 %v261_v56, %v260_v55  ;;  %v438_v23 = vadd.f32 %v259_v63, %v258_v62  ;;  %v143_v55 = vld [vmem:[#allocation2 + $0x3a8] sm:$0xff]  ;;  %v273_v62 = vmul.f32 %v145_v53, %v145_v53 }
  0x74   :  { %424 = vadd.xlane.f32.xlu1 %v423_v6  ;;  %v134_v6 = vld [vmem:[#allocation2 + $0x360] sm:$0xff]  ;;  %v271_v4 = vmul.f32 %v143_v55, %v143_v55 }
  0x75   :  { %421 = vadd.xlane.f32.xlu0 %v420_v21  ;;  %v264_v21 = vmul.f32 %v136_v3, %v136_v3  ;;  %v262_v24 = vmul.f32 %v134_v6, %v134_v6  ;;  %v148_v6 = vld [vmem:[#allocation2 + $0x3d0] sm:$0xff] }
  0x77   :  { %v447_v42 = vadd.f32 %v265_v22, %v264_v21  ;;  %v444_v45 = vadd.f32 %v263_v25, %v262_v24  ;;  %v147_v21 = vld [vmem:[#allocation2 + $0x3c8] sm:$0xff]  ;;  %v277_v24 = vmul.f32 %v149_v9, %v149_v9 }
  0x78   :  { %430 = vadd.xlane.f32.xlu1 %v429_v36  ;;  %v138_v36 = vld [vmem:[#allocation2 + $0x380] sm:$0xff]  ;;  %v275_v35 = vmul.f32 %v147_v21, %v147_v21 }
  0x79   :  { %427 = vadd.xlane.f32.xlu0 %v426_v43  ;;  %v268_v43 = vmul.f32 %v140_v34, %v140_v34  ;;  %v266_v46 = vmul.f32 %v138_v36, %v138_v36  ;;  %v152_v36 = vld [vmem:[#allocation2 + $0x3f0] sm:$0xff] }
  0x7b   :  { %v453_v56 = vadd.f32 %v269_v44, %v268_v43  ;;  %v450_v63 = vadd.f32 %v267_v47, %v266_v46  ;;  %v151_v43 = vld [vmem:[#allocation2 + $0x3e8] sm:$0xff]  ;;  %v281_v46 = vmul.f32 %v153_v37, %v153_v37 }
  0x7c   :  { %436 = vadd.xlane.f32.xlu1 %v435_v54  ;;  %v142_v54 = vld [vmem:[#allocation2 + $0x3a0] sm:$0xff]  ;;  %v279_v53 = vmul.f32 %v151_v43, %v151_v43 }
  0x7d   :  { %433 = vadd.xlane.f32.xlu0 %v432_v57  ;;  %v272_v57 = vmul.f32 %v144_v52, %v144_v52  ;;  %v270_v3 = vmul.f32 %v142_v54, %v142_v54 }
  0x7f   :  { %v459_v22 = vadd.f32 %v273_v62, %v272_v57  ;;  %v456_v25 = vadd.f32 %v271_v4, %v270_v3 }
  0x80   :  { %442 = vadd.xlane.f32.xlu1 %v441_v17  ;;  %v146_v17 = vld [vmem:[#allocation2 + $0x3c0] sm:$0xff] }
  0x81   :  { %439 = vadd.xlane.f32.xlu0 %v438_v23  ;;  %v276_v23 = vmul.f32 %v148_v6, %v148_v6  ;;  %v274_v34 = vmul.f32 %v146_v17, %v146_v17 }
  0x83   :  { %v465_v44 = vadd.f32 %v277_v24, %v276_v23  ;;  %v462_v47 = vadd.f32 %v275_v35, %v274_v34 }
  0x84   :  { %448 = vadd.xlane.f32.xlu1 %v447_v42  ;;  %v150_v42 = vld [vmem:[#allocation2 + $0x3e0] sm:$0xff] }
  0x85   :  { %445 = vadd.xlane.f32.xlu0 %v444_v45  ;;  %v280_v45 = vmul.f32 %v152_v36, %v152_v36  ;;  %v278_v52 = vmul.f32 %v150_v42, %v150_v42 }
  0x87   :  { %v471_v54 = vadd.f32 %v281_v46, %v280_v45  ;;  %v468_v55 = vadd.f32 %v279_v53, %v278_v52 }
  0x88   :  { %454 = vadd.xlane.f32.xlu1 %v453_v56 }
  0x89   :  { %451 = vadd.xlane.f32.xlu0 %v450_v63  ;;  %v797_v63 = vlaneseq }
  0x8c   :  { %460 = vadd.xlane.f32.xlu1 %v459_v22  ;;  %v798_v22 = vshrl.u32 %v797_v63, 7 }
  0x8d   :  { %457 = vadd.xlane.f32.xlu0 %v456_v25 }
  0x8e   :  { %v799_v37 = vsub.s32 0, %v798_v22  ;;  %v803_v42 = vsub.s32 1, %v798_v22 }
  0x90   :  { %466 = vadd.xlane.f32.xlu1 %v465_v44  ;;  %v795_v44 = vld [vmem:[%s1717_s1] sm:$0x3]  ;;  %s1355_s1 = smov [#allocation5]  }
  0x91   :  { %463 = vadd.xlane.f32.xlu0 %v462_v47  ;;  %s1068_s24 = sshll.u32 %s1355_s1, 4  ;;  %s1069_s24 = int_to_ptr.vmem [resolvable:$true] %s1068_s24 }
  0x92   :  { %s1326_s25 = scalar_lea.vmem %s1069_s24, 16384  ;;  %p1331_p9 = scmp.lt.s32.totalorder %s1069_s24, %s1069_s24 }
  0x93   :  { %p1327_p8 = scmp.ne.s32.totalorder %s1069_s24, %s1326_s25  ;;  %p1332_p10 = scmp.lt.s32.totalorder %s1326_s25, %s1326_s25 }
  0x94   :  { %472 = vadd.xlane.f32.xlu1 %v471_v54  ;;  %v1533_v54 = vrot.slane %v795_v44, %v799_v37 }
  0x95   :  { %469 = vadd.xlane.f32.xlu0 %v468_v55  ;;  %v1535_v55 = vrot.slane %v795_v44, %v803_v42  ;;  %p1333_p11 = por %p1332_p10, %p1331_p9 }
  0x97   :  { %p1334_p12 = pnand %p1333_p11, %p1327_p8 }
  0xa5   :  { %v290_v56 = vpop.xlane.xlu1 %289 }
  0xa6   :  { %v477_v57 = vmul.f32 0.00390625, %v290_v56  ;;  %v284_v62 = vpop.xlane.xlu0 %283 }
  0xa7   :  { %v475_v3 = vmul.f32 0.00390625, %v284_v62 }
  0xa8   :  { %v541_v4 = vadd.f32 1e-06, %v477_v57 }
  0xa9   :  { %v539_v6 = vadd.f32 1e-06, %v475_v3  ;;  %v293_v9 = vpop.xlane.xlu1 %292 }
  0xaa   :  { %1084 = vrsqrt.f32 %v541_v4  ;;  %v478_v17 = vmul.f32 0.00390625, %v293_v9  ;;  %v287_v21 = vpop.xlane.xlu0 %286 }
  0xab   :  { %1086 = vrsqrt.f32 %v539_v6  ;;  %v476_v23 = vmul.f32 0.00390625, %v287_v21 }
  0xac   :  { %v542_v24 = vadd.f32 1e-06, %v478_v17 }
  0xad   :  { %v540_v25 = vadd.f32 1e-06, %v476_v23  ;;  %v299_v34 = vpop.xlane.xlu1 %298 }
  0xae   :  { %1088 = vrsqrt.f32 %v542_v24  ;;  %v480_v35 = vmul.f32 0.00390625, %v299_v34  ;;  %v296_v36 = vpop.xlane.xlu0 %295 }
  0xaf   :  { %1090 = vrsqrt.f32 %v540_v25  ;;  %v479_v43 = vmul.f32 0.00390625, %v296_v36 }
  0xb0   :  { %v544_v45 = vadd.f32 1e-06, %v480_v35 }
  0xb1   :  { %v543_v46 = vadd.f32 1e-06, %v479_v43  ;;  %v305_v47 = vpop.xlane.xlu1 %304 }
  0xb2   :  { %1092 = vrsqrt.f32 %v544_v45  ;;  %v482_v52 = vmul.f32 0.00390625, %v305_v47  ;;  %v302_v53 = vpop.xlane.xlu0 %301 }
  0xb3   :  { %1094 = vrsqrt.f32 %v543_v46  ;;  %v481_v56 = vmul.f32 0.00390625, %v302_v53 }
  0xb4   :  { %v1085_v57 = vpop.eup %1084  ;;  %v546_v62 = vadd.f32 1e-06, %v482_v52 }
  0xb5   :  { %v1087_v63 = vpop.eup %1086  ;;  %v671_v3 = vmul.f32 %v1085_v57, %v1386_v0  ;;  %v672_v4 = vmul.f32 %v1085_v57, %v1388_v1  ;;  %v545_v6 = vadd.f32 1e-06, %v481_v56  ;;  %v311_v9 = vpop.xlane.xlu1 %310 }
  0xb6   :  { %v667_v17 = vmul.f32 %v1087_v63, %v1390_v2  ;;  %v668_v21 = vmul.f32 %v1087_v63, %v1396_v5  ;;  %1096 = vrsqrt.f32 %v546_v62  ;;  %v484_v22 = vmul.f32 0.00390625, %v311_v9  ;;  %v308_v23 = vpop.xlane.xlu0 %307 }
  0xb7   :  { %v811_v24 = vmul.f32 %v1533_v54, %v671_v3  ;;  %v812_v25 = vmul.f32 %v1535_v55, %v672_v4  ;;  %1098 = vrsqrt.f32 %v545_v6  ;;  %v483_v34 = vmul.f32 0.00390625, %v308_v23 }
  0xb8   :  { %v1089_v35 = vpop.eup %1088  ;;  %v807_v0 = vmul.f32 %v1533_v54, %v667_v17  ;;  %v808_v1 = vmul.f32 %v1535_v55, %v668_v21  ;;  %v548_v36 = vadd.f32 1e-06, %v484_v22 }
  0xb9   :  { %v1091_v37 = vpop.eup %1090  ;;  %939 = vst [vmem:[#allocation5 + $0x20] sm:$0xff] %v811_v24  ;;  %940 = vst [vmem:[#allocation5 + $0x28] sm:$0xff] %v812_v25  ;;  %v673_v2 = vmul.f32 %v1089_v35, %v1400_v7  ;;  %v674_v5 = vmul.f32 %v1089_v35, %v1402_v8  ;;  %v547_v42 = vadd.f32 1e-06, %v483_v34  ;;  %v317_v43 = vpop.xlane.xlu1 %316 }
  0xba   :  { %935 = vst [vmem:[#allocation5] sm:$0xff] %v807_v0  ;;  %936 = vst [vmem:[#allocation5 + $0x8] sm:$0xff] %v808_v1  ;;  %v669_v44 = vmul.f32 %v1091_v37, %v1410_v12  ;;  %v670_v45 = vmul.f32 %v1091_v37, %v1412_v13  ;;  %1100 = vrsqrt.f32 %v548_v36  ;;  %v486_v46 = vmul.f32 0.00390625, %v317_v43  ;;  %v314_v47 = vpop.xlane.xlu0 %313 }
  0xbb   :  { %v813_v52 = vmul.f32 %v1533_v54, %v673_v2  ;;  %v814_v53 = vmul.f32 %v1535_v55, %v674_v5  ;;  %1102 = vrsqrt.f32 %v547_v42  ;;  %v485_v56 = vmul.f32 0.00390625, %v314_v47 }
  0xbc   :  { %v1093_v7 = vpop.eup %1092  ;;  %v809_v8 = vmul.f32 %v1533_v54, %v669_v44  ;;  %v810_v57 = vmul.f32 %v1535_v55, %v670_v45  ;;  %v550_v62 = vadd.f32 1e-06, %v486_v46 }
  0xbd   :  { %v1095_v63 = vpop.eup %1094  ;;  %941 = vst [vmem:[#allocation5 + $0x30] sm:$0xff] %v813_v52  ;;  %942 = vst [vmem:[#allocation5 + $0x38] sm:$0xff] %v814_v53  ;;  %v677_v12 = vmul.f32 %v1093_v7, %v1414_v14  ;;  %v678_v13 = vmul.f32 %v1093_v7, %v1420_v18  ;;  %v549_v3 = vadd.f32 1e-06, %v485_v56  ;;  %v323_v4 = vpop.xlane.xlu1 %322 }
  0xbe   :  { %937 = vst [vmem:[#allocation5 + $0x10] sm:$0xff] %v809_v8  ;;  %938 = vst [vmem:[#allocation5 + $0x18] sm:$0xff] %v810_v57  ;;  %v675_v6 = vmul.f32 %v1095_v63, %v1422_v19  ;;  %v676_v9 = vmul.f32 %v1095_v63, %v1424_v20  ;;  %1104 = vrsqrt.f32 %v550_v62  ;;  %v488_v17 = vmul.f32 0.00390625, %v323_v4  ;;  %v320_v21 = vpop.xlane.xlu0 %319 }
  0xbf   :  { %v817_v22 = vmul.f32 %v1533_v54, %v677_v12  ;;  %v818_v23 = vmul.f32 %v1535_v55, %v678_v13  ;;  %1106 = vrsqrt.f32 %v549_v3  ;;  %v487_v24 = vmul.f32 0.00390625, %v320_v21 }
  0xc0   :  { %v1097_v14 = vpop.eup %1096  ;;  %v815_v18 = vmul.f32 %v1533_v54, %v675_v6  ;;  %v816_v25 = vmul.f32 %v1535_v55, %v676_v9  ;;  %v552_v34 = vadd.f32 1e-06, %v488_v17 }
  0xc1   :  { %v1099_v35 = vpop.eup %1098  ;;  %945 = vst [vmem:[#allocation5 + $0x50] sm:$0xff] %v817_v22  ;;  %946 = vst [vmem:[#allocation5 + $0x58] sm:$0xff] %v818_v23  ;;  %v681_v19 = vmul.f32 %v1097_v14, %v1434_v28  ;;  %v682_v20 = vmul.f32 %v1097_v14, %v1436_v29  ;;  %v551_v0 = vadd.f32 1e-06, %v487_v24  ;;  %v329_v1 = vpop.xlane.xlu1 %328 }
  0xc2   :  { %943 = vst [vmem:[#allocation5 + $0x40] sm:$0xff] %v815_v18  ;;  %944 = vst [vmem:[#allocation5 + $0x48] sm:$0xff] %v816_v25  ;;  %v679_v36 = vmul.f32 %v1099_v35, %v1438_v30  ;;  %v680_v37 = vmul.f32 %v1099_v35, %v1440_v31  ;;  %1108 = vrsqrt.f32 %v552_v34  ;;  %v490_v2 = vmul.f32 0.00390625, %v329_v1  ;;  %v326_v5 = vpop.xlane.xlu0 %325 }
  0xc3   :  { %v821_v42 = vmul.f32 %v1533_v54, %v681_v19  ;;  %v822_v43 = vmul.f32 %v1535_v55, %v682_v20  ;;  %1110 = vrsqrt.f32 %v551_v0  ;;  %v489_v44 = vmul.f32 0.00390625, %v326_v5 }
  0xc4   :  { %v1101_v28 = vpop.eup %1100  ;;  %v819_v29 = vmul.f32 %v1533_v54, %v679_v36  ;;  %v820_v45 = vmul.f32 %v1535_v55, %v680_v37  ;;  %v554_v46 = vadd.f32 1e-06, %v490_v2 }
  0xc5   :  { %v1103_v47 = vpop.eup %1102  ;;  %949 = vst [vmem:[#allocation5 + $0x70] sm:$0xff] %v821_v42  ;;  %950 = vst [vmem:[#allocation5 + $0x78] sm:$0xff] %v822_v43  ;;  %v685_v30 = vmul.f32 %v1101_v28, %v1450_v38  ;;  %v686_v31 = vmul.f32 %v1101_v28, %v1452_v39  ;;  %v553_v52 = vadd.f32 1e-06, %v489_v44  ;;  %v335_v53 = vpop.xlane.xlu1 %334 }
  0xc6   :  { %947 = vst [vmem:[#allocation5 + $0x60] sm:$0xff] %v819_v29  ;;  %948 = vst [vmem:[#allocation5 + $0x68] sm:$0xff] %v820_v45  ;;  %v683_v56 = vmul.f32 %v1103_v47, %v1454_v40  ;;  %v684_v7 = vmul.f32 %v1103_v47, %v1456_v41  ;;  %1112 = vrsqrt.f32 %v554_v46  ;;  %v492_v8 = vmul.f32 0.00390625, %v335_v53  ;;  %v332_v57 = vpop.xlane.xlu0 %331 }
  0xc7   :  { %v825_v62 = vmul.f32 %v1533_v54, %v685_v30  ;;  %v826_v63 = vmul.f32 %v1535_v55, %v686_v31  ;;  %1114 = vrsqrt.f32 %v553_v52  ;;  %v491_v12 = vmul.f32 0.00390625, %v332_v57 }
  0xc8   :  { %v1105_v38 = vpop.eup %1104  ;;  %v823_v39 = vmul.f32 %v1533_v54, %v683_v56  ;;  %v824_v13 = vmul.f32 %v1535_v55, %v684_v7  ;;  %v556_v3 = vadd.f32 1e-06, %v492_v8 }
  0xc9   :  { %v1107_v4 = vpop.eup %1106  ;;  %953 = vst [vmem:[#allocation5 + $0x90] sm:$0xff] %v825_v62  ;;  %954 = vst [vmem:[#allocation5 + $0x98] sm:$0xff] %v826_v63  ;;  %v689_v40 = vmul.f32 %v1105_v38, %v1466_v48  ;;  %v690_v41 = vmul.f32 %v1105_v38, %v1468_v49  ;;  %v555_v6 = vadd.f32 1e-06, %v491_v12  ;;  %v341_v9 = vpop.xlane.xlu1 %340 }
  0xca   :  { %951 = vst [vmem:[#allocation5 + $0x80] sm:$0xff] %v823_v39  ;;  %952 = vst [vmem:[#allocation5 + $0x88] sm:$0xff] %v824_v13  ;;  %v687_v17 = vmul.f32 %v1107_v4, %v1470_v50  ;;  %v688_v21 = vmul.f32 %v1107_v4, %v1472_v51  ;;  %1116 = vrsqrt.f32 %v556_v3  ;;  %v494_v22 = vmul.f32 0.00390625, %v341_v9  ;;  %v338_v23 = vpop.xlane.xlu0 %337 }
  0xcb   :  { %v829_v24 = vmul.f32 %v1533_v54, %v689_v40  ;;  %v830_v14 = vmul.f32 %v1535_v55, %v690_v41  ;;  %1118 = vrsqrt.f32 %v555_v6  ;;  %v493_v18 = vmul.f32 0.00390625, %v338_v23 }
  0xcc   :  { %v1109_v48 = vpop.eup %1108  ;;  %v827_v49 = vmul.f32 %v1533_v54, %v687_v17  ;;  %v828_v25 = vmul.f32 %v1535_v55, %v688_v21  ;;  %v558_v34 = vadd.f32 1e-06, %v494_v22  ;;  %v1213_v17 = vld [vmem:[#allocation2 + $0x138] sm:$0xff] }
  0xcd   :  { %v1111_v35 = vpop.eup %1110  ;;  %957 = vst [vmem:[#allocation5 + $0xb0] sm:$0xff] %v829_v24  ;;  %958 = vst [vmem:[#allocation5 + $0xb8] sm:$0xff] %v830_v14  ;;  %v693_v50 = vmul.f32 %v1109_v48, %v1482_v58  ;;  %v694_v51 = vmul.f32 %v1109_v48, %v1484_v59  ;;  %v557_v19 = vadd.f32 1e-06, %v493_v18  ;;  %v347_v20 = vpop.xlane.xlu1 %346  ;;  %v1214_v24 = vld [vmem:[#allocation2 + $0x120] sm:$0xff]  ;;  %v1215_v18 = vld [vmem:[#allocation2 + $0x128] sm:$0xff] }
  0xce   :  { %955 = vst [vmem:[#allocation5 + $0xa0] sm:$0xff] %v827_v49  ;;  %956 = vst [vmem:[#allocation5 + $0xa8] sm:$0xff] %v828_v25  ;;  %v691_v0 = vmul.f32 %v1111_v35, %v1486_v60  ;;  %v692_v1 = vmul.f32 %v1111_v35, %v1488_v61  ;;  %1120 = vrsqrt.f32 %v558_v34  ;;  %v496_v36 = vmul.f32 0.00390625, %v347_v20  ;;  %v344_v37 = vpop.xlane.xlu0 %343 }
  0xcf   :  { %v833_v2 = vmul.f32 %v1533_v54, %v693_v50  ;;  %v834_v5 = vmul.f32 %v1535_v55, %v694_v51  ;;  %1122 = vrsqrt.f32 %v557_v19  ;;  %v495_v42 = vmul.f32 0.00390625, %v344_v37 }
  0xd0   :  { %v1113_v58 = vpop.eup %1112  ;;  %v831_v59 = vmul.f32 %v1533_v54, %v691_v0  ;;  %v832_v43 = vmul.f32 %v1535_v55, %v692_v1  ;;  %v560_v44 = vadd.f32 1e-06, %v496_v36  ;;  %v1216_v36 = vld [vmem:[#allocation2 + $0x150] sm:$0xff] }
  0xd1   :  { %v1115_v28 = vpop.eup %1114  ;;  %961 = vst [vmem:[#allocation5 + $0xd0] sm:$0xff] %v833_v2  ;;  %962 = vst [vmem:[#allocation5 + $0xd8] sm:$0xff] %v834_v5  ;;  %v697_v60 = vmul.f32 %v1113_v58, %v1498_v10  ;;  %v698_v61 = vmul.f32 %v1113_v58, %v1500_v11  ;;  %v559_v29 = vadd.f32 1e-06, %v495_v42  ;;  %v353_v45 = vpop.xlane.xlu1 %352  ;;  %v1217_v2 = vld [vmem:[#allocation2 + $0x158] sm:$0xff] }
  0xd2   :  { %959 = vst [vmem:[#allocation5 + $0xc0] sm:$0xff] %v831_v59  ;;  %960 = vst [vmem:[#allocation5 + $0xc8] sm:$0xff] %v832_v43  ;;  %v695_v46 = vmul.f32 %v1115_v28, %v1502_v15  ;;  %v696_v47 = vmul.f32 %v1115_v28, %v1504_v16  ;;  %1124 = vrsqrt.f32 %v560_v44  ;;  %v498_v30 = vmul.f32 0.00390625, %v353_v45  ;;  %v350_v31 = vpop.xlane.xlu0 %349  ;;  %v1218_v59 = vld [vmem:[#allocation2 + $0x140] sm:$0xff]  ;;  %v1219_v44 = vld [vmem:[#allocation2 + $0x148] sm:$0xff] }
  0xd3   :  { %v837_v52 = vmul.f32 %v1533_v54, %v697_v60  ;;  %v838_v53 = vmul.f32 %v1535_v55, %v698_v61  ;;  %1126 = vrsqrt.f32 %v559_v29  ;;  %v497_v56 = vmul.f32 0.00390625, %v350_v31 }
  0xd4   :  { %v1117_v10 = vpop.eup %1116  ;;  %v835_v11 = vmul.f32 %v1533_v54, %v695_v46  ;;  %v836_v7 = vmul.f32 %v1535_v55, %v696_v47  ;;  %v562_v8 = vadd.f32 1e-06, %v498_v30 }
  0xd5   :  { %v1119_v57 = vpop.eup %1118  ;;  %965 = vst [vmem:[#allocation5 + $0xf0] sm:$0xff] %v837_v52  ;;  %966 = vst [vmem:[#allocation5 + $0xf8] sm:$0xff] %v838_v53  ;;  %v701_v15 = vmul.f32 %v1117_v10, %v1514_v26  ;;  %v702_v16 = vmul.f32 %v1117_v10, %v1516_v27  ;;  %v561_v62 = vadd.f32 1e-06, %v497_v56  ;;  %v359_v63 = vpop.xlane.xlu1 %358  ;;  %v1220_v56 = vld [vmem:[#allocation2 + $0x170] sm:$0xff] }
  0xd6   :  { %963 = vst [vmem:[#allocation5 + $0xe0] sm:$0xff] %v835_v11  ;;  %964 = vst [vmem:[#allocation5 + $0xe8] sm:$0xff] %v836_v7  ;;  %v699_v12 = vmul.f32 %v1119_v57, %v1518_v32  ;;  %v700_v38 = vmul.f32 %v1119_v57, %v1520_v33  ;;  %1128 = vrsqrt.f32 %v562_v8  ;;  %v500_v39 = vmul.f32 0.00390625, %v359_v63  ;;  %v356_v13 = vpop.xlane.xlu0 %355  ;;  %v1212_v32 = vld [vmem:[#allocation2 + $0x130] sm:$0xff]  ;;  %v1221_v11 = vld [vmem:[#allocation2 + $0x178] sm:$0xff] }
  0xd7   :  { %v841_v3 = vmul.f32 %v1533_v54, %v701_v15  ;;  %v842_v4 = vmul.f32 %v1535_v55, %v702_v16  ;;  %1130 = vrsqrt.f32 %v561_v62  ;;  %v499_v40 = vmul.f32 0.00390625, %v356_v13  ;;  %v1222_v15 = vld [vmem:[#allocation2 + $0x160] sm:$0xff]  ;;  %v1223_v62 = vld [vmem:[#allocation2 + $0x168] sm:$0xff] }
  0xd8   :  { %v1121_v26 = vpop.eup %1120  ;;  %v839_v27 = vmul.f32 %v1533_v54, %v699_v12  ;;  %v840_v41 = vmul.f32 %v1535_v55, %v700_v38  ;;  %v564_v6 = vadd.f32 1e-06, %v500_v39 }
  0xd9   :  { %v1123_v9 = vpop.eup %1122  ;;  %969 = vst [vmem:[#allocation5 + $0x110] sm:$0xff] %v841_v3  ;;  %970 = vst [vmem:[#allocation5 + $0x118] sm:$0xff] %v842_v4  ;;  %v705_v33 = vmul.f32 %v1212_v32, %v1121_v26  ;;  %v706_v21 = vmul.f32 %v1213_v17, %v1121_v26  ;;  %v563_v22 = vadd.f32 1e-06, %v499_v40  ;;  %v365_v23 = vpop.xlane.xlu1 %364  ;;  %v1225_v32 = vld [vmem:[#allocation2 + $0x198] sm:$0xff] }
  0xda   :  { %967 = vst [vmem:[#allocation5 + $0x100] sm:$0xff] %v839_v27  ;;  %968 = vst [vmem:[#allocation5 + $0x108] sm:$0xff] %v840_v41  ;;  %v703_v14 = vmul.f32 %v1214_v24, %v1123_v9  ;;  %v704_v48 = vmul.f32 %v1215_v18, %v1123_v9  ;;  %1132 = vrsqrt.f32 %v564_v6  ;;  %v502_v49 = vmul.f32 0.00390625, %v365_v23  ;;  %v362_v25 = vpop.xlane.xlu0 %361  ;;  %v1224_v6 = vld [vmem:[#allocation2 + $0x190] sm:$0xff]  ;;  %v1227_v24 = vld [vmem:[#allocation2 + $0x188] sm:$0xff] }
  0xdb   :  { %v845_v34 = vmul.f32 %v1533_v54, %v705_v33  ;;  %v846_v35 = vmul.f32 %v1535_v55, %v706_v21  ;;  %1134 = vrsqrt.f32 %v563_v22  ;;  %v501_v50 = vmul.f32 0.00390625, %v362_v25  ;;  %v1226_v22 = vld [vmem:[#allocation2 + $0x180] sm:$0xff] }
  0xdc   :  { %v1125_v51 = vpop.eup %1124  ;;  %v843_v19 = vmul.f32 %v1533_v54, %v703_v14  ;;  %v844_v20 = vmul.f32 %v1535_v55, %v704_v48  ;;  %v566_v0 = vadd.f32 1e-06, %v502_v49 }
  0xdd   :  { %v1127_v1 = vpop.eup %1126  ;;  %973 = vst [vmem:[#allocation5 + $0x130] sm:$0xff] %v845_v34  ;;  %974 = vst [vmem:[#allocation5 + $0x138] sm:$0xff] %v846_v35  ;;  %v709_v37 = vmul.f32 %v1216_v36, %v1125_v51  ;;  %v710_v5 = vmul.f32 %v1217_v2, %v1125_v51  ;;  %v565_v42 = vadd.f32 1e-06, %v501_v50  ;;  %v371_v58 = vpop.xlane.xlu1 %370  ;;  %v1229_v36 = vld [vmem:[#allocation2 + $0x1b8] sm:$0xff] }
  0xde   :  { %971 = vst [vmem:[#allocation5 + $0x120] sm:$0xff] %v843_v19  ;;  %972 = vst [vmem:[#allocation5 + $0x128] sm:$0xff] %v844_v20  ;;  %v707_v43 = vmul.f32 %v1218_v59, %v1127_v1  ;;  %v708_v28 = vmul.f32 %v1219_v44, %v1127_v1  ;;  %1136 = vrsqrt.f32 %v566_v0  ;;  %v504_v60 = vmul.f32 0.00390625, %v371_v58  ;;  %v368_v61 = vpop.xlane.xlu0 %367  ;;  %v1228_v0 = vld [vmem:[#allocation2 + $0x1b0] sm:$0xff]  ;;  %v1231_v59 = vld [vmem:[#allocation2 + $0x1a8] sm:$0xff] }
  0xdf   :  { %v849_v29 = vmul.f32 %v1533_v54, %v709_v37  ;;  %v850_v45 = vmul.f32 %v1535_v55, %v710_v5  ;;  %1138 = vrsqrt.f32 %v565_v42  ;;  %v503_v46 = vmul.f32 0.00390625, %v368_v61  ;;  %v1230_v42 = vld [vmem:[#allocation2 + $0x1a0] sm:$0xff] }
  0xe0   :  { %v1129_v47 = vpop.eup %1128  ;;  %v847_v30 = vmul.f32 %v1533_v54, %v707_v43  ;;  %v848_v31 = vmul.f32 %v1535_v55, %v708_v28  ;;  %v568_v52 = vadd.f32 1e-06, %v504_v60 }
  0xe1   :  { %v1131_v53 = vpop.eup %1130  ;;  %977 = vst [vmem:[#allocation5 + $0x150] sm:$0xff] %v849_v29  ;;  %978 = vst [vmem:[#allocation5 + $0x158] sm:$0xff] %v850_v45  ;;  %v713_v10 = vmul.f32 %v1220_v56, %v1129_v47  ;;  %v714_v7 = vmul.f32 %v1221_v11, %v1129_v47  ;;  %v567_v8 = vadd.f32 1e-06, %v503_v46  ;;  %v377_v57 = vpop.xlane.xlu1 %376  ;;  %v1233_v56 = vld [vmem:[#allocation2 + $0x1d8] sm:$0xff] }
  0xe2   :  { %975 = vst [vmem:[#allocation5 + $0x140] sm:$0xff] %v847_v30  ;;  %976 = vst [vmem:[#allocation5 + $0x148] sm:$0xff] %v848_v31  ;;  %v711_v16 = vmul.f32 %v1222_v15, %v1131_v53  ;;  %v712_v63 = vmul.f32 %v1223_v62, %v1131_v53  ;;  %1140 = vrsqrt.f32 %v568_v52  ;;  %v506_v12 = vmul.f32 0.00390625, %v377_v57  ;;  %v374_v38 = vpop.xlane.xlu0 %373  ;;  %v1232_v52 = vld [vmem:[#allocation2 + $0x1d0] sm:$0xff]  ;;  %v1235_v15 = vld [vmem:[#allocation2 + $0x1c8] sm:$0xff] }
  0xe3   :  { %v853_v39 = vmul.f32 %v1533_v54, %v713_v10  ;;  %v854_v13 = vmul.f32 %v1535_v55, %v714_v7  ;;  %1142 = vrsqrt.f32 %v567_v8  ;;  %v505_v3 = vmul.f32 0.00390625, %v374_v38  ;;  %v1234_v8 = vld [vmem:[#allocation2 + $0x1c0] sm:$0xff] }
  0xe4   :  { %v1133_v4 = vpop.eup %1132  ;;  %v851_v40 = vmul.f32 %v1533_v54, %v711_v16  ;;  %v852_v26 = vmul.f32 %v1535_v55, %v712_v63  ;;  %v570_v27 = vadd.f32 1e-06, %v506_v12 }
  0xe5   :  { %v1135_v41 = vpop.eup %1134  ;;  %981 = vst [vmem:[#allocation5 + $0x170] sm:$0xff] %v853_v39  ;;  %982 = vst [vmem:[#allocation5 + $0x178] sm:$0xff] %v854_v13  ;;  %v717_v9 = vmul.f32 %v1224_v6, %v1133_v4  ;;  %v718_v33 = vmul.f32 %v1225_v32, %v1133_v4  ;;  %v569_v17 = vadd.f32 1e-06, %v505_v3  ;;  %v383_v21 = vpop.xlane.xlu1 %382  ;;  %v1237_v6 = vld [vmem:[#allocation2 + $0x1f8] sm:$0xff] }
  0xe6   :  { %979 = vst [vmem:[#allocation5 + $0x160] sm:$0xff] %v851_v40  ;;  %980 = vst [vmem:[#allocation5 + $0x168] sm:$0xff] %v852_v26  ;;  %v715_v23 = vmul.f32 %v1226_v22, %v1135_v41  ;;  %v716_v14 = vmul.f32 %v1227_v24, %v1135_v41  ;;  %1144 = vrsqrt.f32 %v570_v27  ;;  %v508_v18 = vmul.f32 0.00390625, %v383_v21  ;;  %v380_v48 = vpop.xlane.xlu0 %379  ;;  %v1236_v27 = vld [vmem:[#allocation2 + $0x1f0] sm:$0xff]  ;;  %v1239_v22 = vld [vmem:[#allocation2 + $0x1e8] sm:$0xff] }
  0xe7   :  { %v857_v49 = vmul.f32 %v1533_v54, %v717_v9  ;;  %v858_v25 = vmul.f32 %v1535_v55, %v718_v33  ;;  %1146 = vrsqrt.f32 %v569_v17  ;;  %v507_v34 = vmul.f32 0.00390625, %v380_v48  ;;  %v1238_v17 = vld [vmem:[#allocation2 + $0x1e0] sm:$0xff] }
  0xe8   :  { %v1137_v35 = vpop.eup %1136  ;;  %v855_v50 = vmul.f32 %v1533_v54, %v715_v23  ;;  %v856_v51 = vmul.f32 %v1535_v55, %v716_v14  ;;  %v572_v19 = vadd.f32 1e-06, %v508_v18 }
  0xe9   :  { %v1139_v20 = vpop.eup %1138  ;;  %985 = vst [vmem:[#allocation5 + $0x190] sm:$0xff] %v857_v49  ;;  %986 = vst [vmem:[#allocation5 + $0x198] sm:$0xff] %v858_v25  ;;  %v721_v1 = vmul.f32 %v1228_v0, %v1137_v35  ;;  %v722_v37 = vmul.f32 %v1229_v36, %v1137_v35  ;;  %v571_v2 = vadd.f32 1e-06, %v507_v34  ;;  %v389_v5 = vpop.xlane.xlu1 %388  ;;  %v1241_v0 = vld [vmem:[#allocation2 + $0x218] sm:$0xff] }
  0xea   :  { %983 = vst [vmem:[#allocation5 + $0x180] sm:$0xff] %v855_v50  ;;  %984 = vst [vmem:[#allocation5 + $0x188] sm:$0xff] %v856_v51  ;;  %v719_v58 = vmul.f32 %v1230_v42, %v1139_v20  ;;  %v720_v43 = vmul.f32 %v1231_v59, %v1139_v20  ;;  %1148 = vrsqrt.f32 %v572_v19  ;;  %v510_v44 = vmul.f32 0.00390625, %v389_v5  ;;  %v386_v28 = vpop.xlane.xlu0 %385  ;;  %v1240_v19 = vld [vmem:[#allocation2 + $0x210] sm:$0xff]  ;;  %v1243_v42 = vld [vmem:[#allocation2 + $0x208] sm:$0xff] }
  0xeb   :  { %v861_v60 = vmul.f32 %v1533_v54, %v721_v1  ;;  %v862_v61 = vmul.f32 %v1535_v55, %v722_v37  ;;  %1150 = vrsqrt.f32 %v571_v2  ;;  %v509_v29 = vmul.f32 0.00390625, %v386_v28  ;;  %v1242_v2 = vld [vmem:[#allocation2 + $0x200] sm:$0xff] }
  0xec   :  { %v1141_v45 = vpop.eup %1140  ;;  %v859_v46 = vmul.f32 %v1533_v54, %v719_v58  ;;  %v860_v47 = vmul.f32 %v1535_v55, %v720_v43  ;;  %v574_v30 = vadd.f32 1e-06, %v510_v44 }
  0xed   :  { %v1143_v31 = vpop.eup %1142  ;;  %989 = vst [vmem:[#allocation5 + $0x1b0] sm:$0xff] %v861_v60  ;;  %990 = vst [vmem:[#allocation5 + $0x1b8] sm:$0xff] %v862_v61  ;;  %v725_v53 = vmul.f32 %v1232_v52, %v1141_v45  ;;  %v726_v10 = vmul.f32 %v1233_v56, %v1141_v45  ;;  %v573_v11 = vadd.f32 1e-06, %v509_v29  ;;  %v395_v7 = vpop.xlane.xlu1 %394  ;;  %v1245_v52 = vld [vmem:[#allocation2 + $0x238] sm:$0xff] }
  0xee   :  { %987 = vst [vmem:[#allocation5 + $0x1a0] sm:$0xff] %v859_v46  ;;  %988 = vst [vmem:[#allocation5 + $0x1a8] sm:$0xff] %v860_v47  ;;  %v723_v57 = vmul.f32 %v1234_v8, %v1143_v31  ;;  %v724_v16 = vmul.f32 %v1235_v15, %v1143_v31  ;;  %1152 = vrsqrt.f32 %v574_v30  ;;  %v512_v62 = vmul.f32 0.00390625, %v395_v7  ;;  %v392_v63 = vpop.xlane.xlu0 %391  ;;  %v1244_v30 = vld [vmem:[#allocation2 + $0x230] sm:$0xff]  ;;  %v1247_v8 = vld [vmem:[#allocation2 + $0x228] sm:$0xff] }
  0xef   :  { %v865_v12 = vmul.f32 %v1533_v54, %v725_v53  ;;  %v866_v38 = vmul.f32 %v1535_v55, %v726_v10  ;;  %1154 = vrsqrt.f32 %v573_v11  ;;  %v511_v39 = vmul.f32 0.00390625, %v392_v63  ;;  %v1246_v11 = vld [vmem:[#allocation2 + $0x220] sm:$0xff] }
  0xf0   :  { %v1145_v13 = vpop.eup %1144  ;;  %v863_v3 = vmul.f32 %v1533_v54, %v723_v57  ;;  %v864_v4 = vmul.f32 %v1535_v55, %v724_v16  ;;  %v576_v40 = vadd.f32 1e-06, %v512_v62 }
  0xf1   :  { %v1147_v26 = vpop.eup %1146  ;;  %993 = vst [vmem:[#allocation5 + $0x1d0] sm:$0xff] %v865_v12  ;;  %994 = vst [vmem:[#allocation5 + $0x1d8] sm:$0xff] %v866_v38  ;;  %v729_v41 = vmul.f32 %v1236_v27, %v1145_v13  ;;  %v730_v9 = vmul.f32 %v1237_v6, %v1145_v13  ;;  %v575_v32 = vadd.f32 1e-06, %v511_v39  ;;  %v401_v33 = vpop.xlane.xlu1 %400  ;;  %v1249_v27 = vld [vmem:[#allocation2 + $0x258] sm:$0xff] }
  0xf2   :  { %991 = vst [vmem:[#allocation5 + $0x1c0] sm:$0xff] %v863_v3  ;;  %992 = vst [vmem:[#allocation5 + $0x1c8] sm:$0xff] %v864_v4  ;;  %v727_v21 = vmul.f32 %v1238_v17, %v1147_v26  ;;  %v728_v23 = vmul.f32 %v1239_v22, %v1147_v26  ;;  %1156 = vrsqrt.f32 %v576_v40  ;;  %v514_v24 = vmul.f32 0.00390625, %v401_v33  ;;  %v398_v14 = vpop.xlane.xlu0 %397  ;;  %v1248_v40 = vld [vmem:[#allocation2 + $0x250] sm:$0xff]  ;;  %v1251_v17 = vld [vmem:[#allocation2 + $0x248] sm:$0xff] }
  0xf3   :  { %v869_v18 = vmul.f32 %v1533_v54, %v729_v41  ;;  %v870_v48 = vmul.f32 %v1535_v55, %v730_v9  ;;  %1158 = vrsqrt.f32 %v575_v32  ;;  %v513_v49 = vmul.f32 0.00390625, %v398_v14  ;;  %v1250_v32 = vld [vmem:[#allocation2 + $0x240] sm:$0xff] }
  0xf4   :  { %v1149_v25 = vpop.eup %1148  ;;  %v867_v34 = vmul.f32 %v1533_v54, %v727_v21  ;;  %v868_v35 = vmul.f32 %v1535_v55, %v728_v23  ;;  %v578_v50 = vadd.f32 1e-06, %v514_v24 }
  0xf5   :  { %v1151_v51 = vpop.eup %1150  ;;  %997 = vst [vmem:[#allocation5 + $0x1f0] sm:$0xff] %v869_v18  ;;  %998 = vst [vmem:[#allocation5 + $0x1f8] sm:$0xff] %v870_v48  ;;  %v733_v20 = vmul.f32 %v1240_v19, %v1149_v25  ;;  %v734_v1 = vmul.f32 %v1241_v0, %v1149_v25  ;;  %v577_v36 = vadd.f32 1e-06, %v513_v49  ;;  %v407_v37 = vpop.xlane.xlu1 %406  ;;  %v1253_v19 = vld [vmem:[#allocation2 + $0x278] sm:$0xff] }
  0xf6   :  { %995 = vst [vmem:[#allocation5 + $0x1e0] sm:$0xff] %v867_v34  ;;  %996 = vst [vmem:[#allocation5 + $0x1e8] sm:$0xff] %v868_v35  ;;  %v731_v5 = vmul.f32 %v1242_v2, %v1151_v51  ;;  %v732_v58 = vmul.f32 %v1243_v42, %v1151_v51  ;;  %1160 = vrsqrt.f32 %v578_v50  ;;  %v516_v59 = vmul.f32 0.00390625, %v407_v37  ;;  %v404_v43 = vpop.xlane.xlu0 %403  ;;  %v1252_v50 = vld [vmem:[#allocation2 + $0x270] sm:$0xff]  ;;  %v1255_v2 = vld [vmem:[#allocation2 + $0x268] sm:$0xff] }
  0xf7   :  { %v873_v44 = vmul.f32 %v1533_v54, %v733_v20  ;;  %v874_v28 = vmul.f32 %v1535_v55, %v734_v1  ;;  %1162 = vrsqrt.f32 %v577_v36  ;;  %v515_v60 = vmul.f32 0.00390625, %v404_v43  ;;  %v1254_v36 = vld [vmem:[#allocation2 + $0x260] sm:$0xff] }
  0xf8   :  { %v1153_v61 = vpop.eup %1152  ;;  %v871_v29 = vmul.f32 %v1533_v54, %v731_v5  ;;  %v872_v45 = vmul.f32 %v1535_v55, %v732_v58  ;;  %v580_v46 = vadd.f32 1e-06, %v516_v59 }
  0xf9   :  { %v1155_v47 = vpop.eup %1154  ;;  %1001 = vst [vmem:[#allocation5 + $0x210] sm:$0xff] %v873_v44  ;;  %1002 = vst [vmem:[#allocation5 + $0x218] sm:$0xff] %v874_v28  ;;  %v737_v31 = vmul.f32 %v1244_v30, %v1153_v61  ;;  %v738_v53 = vmul.f32 %v1245_v52, %v1153_v61  ;;  %v579_v56 = vadd.f32 1e-06, %v515_v60  ;;  %v413_v10 = vpop.xlane.xlu1 %412  ;;  %v1257_v30 = vld [vmem:[#allocation2 + $0x298] sm:$0xff] }
  0xfa   :  { %999 = vst [vmem:[#allocation5 + $0x200] sm:$0xff] %v871_v29  ;;  %1000 = vst [vmem:[#allocation5 + $0x208] sm:$0xff] %v872_v45  ;;  %v735_v7 = vmul.f32 %v1246_v11, %v1155_v47  ;;  %v736_v57 = vmul.f32 %v1247_v8, %v1155_v47  ;;  %1164 = vrsqrt.f32 %v580_v46  ;;  %v518_v15 = vmul.f32 0.00390625, %v413_v10  ;;  %v410_v16 = vpop.xlane.xlu0 %409  ;;  %v1256_v46 = vld [vmem:[#allocation2 + $0x290] sm:$0xff]  ;;  %v1259_v11 = vld [vmem:[#allocation2 + $0x288] sm:$0xff] }
  0xfb   :  { %v877_v62 = vmul.f32 %v1533_v54, %v737_v31  ;;  %v878_v63 = vmul.f32 %v1535_v55, %v738_v53  ;;  %1166 = vrsqrt.f32 %v579_v56  ;;  %v517_v12 = vmul.f32 0.00390625, %v410_v16  ;;  %v1258_v56 = vld [vmem:[#allocation2 + $0x280] sm:$0xff] }
  0xfc   :  { %v1157_v38 = vpop.eup %1156  ;;  %v875_v39 = vmul.f32 %v1533_v54, %v735_v7  ;;  %v876_v13 = vmul.f32 %v1535_v55, %v736_v57  ;;  %v582_v3 = vadd.f32 1e-06, %v518_v15 }
  0xfd   :  { %v1159_v4 = vpop.eup %1158  ;;  %1005 = vst [vmem:[#allocation5 + $0x230] sm:$0xff] %v877_v62  ;;  %1006 = vst [vmem:[#allocation5 + $0x238] sm:$0xff] %v878_v63  ;;  %v741_v26 = vmul.f32 %v1248_v40, %v1157_v38  ;;  %v742_v41 = vmul.f32 %v1249_v27, %v1157_v38  ;;  %v581_v6 = vadd.f32 1e-06, %v517_v12  ;;  %v419_v9 = vpop.xlane.xlu1 %418  ;;  %v1261_v40 = vld [vmem:[#allocation2 + $0x2b8] sm:$0xff] }
  0xfe   :  { %1003 = vst [vmem:[#allocation5 + $0x220] sm:$0xff] %v875_v39  ;;  %1004 = vst [vmem:[#allocation5 + $0x228] sm:$0xff] %v876_v13  ;;  %v739_v33 = vmul.f32 %v1250_v32, %v1159_v4  ;;  %v740_v21 = vmul.f32 %v1251_v17, %v1159_v4  ;;  %1168 = vrsqrt.f32 %v582_v3  ;;  %v520_v22 = vmul.f32 0.00390625, %v419_v9  ;;  %v416_v23 = vpop.xlane.xlu0 %415  ;;  %v1260_v3 = vld [vmem:[#allocation2 + $0x2b0] sm:$0xff]  ;;  %v1263_v32 = vld [vmem:[#allocation2 + $0x2a8] sm:$0xff] }
  0xff   :  { %v881_v24 = vmul.f32 %v1533_v54, %v741_v26  ;;  %v882_v14 = vmul.f32 %v1535_v55, %v742_v41  ;;  %1170 = vrsqrt.f32 %v581_v6  ;;  %v519_v18 = vmul.f32 0.00390625, %v416_v23  ;;  %v1262_v6 = vld [vmem:[#allocation2 + $0x2a0] sm:$0xff] }
 0x100   :  { %v1161_v48 = vpop.eup %1160  ;;  %v879_v49 = vmul.f32 %v1533_v54, %v739_v33  ;;  %v880_v25 = vmul.f32 %v1535_v55, %v740_v21  ;;  %v584_v34 = vadd.f32 1e-06, %v520_v22 }
 0x101   :  { %v1163_v35 = vpop.eup %1162  ;;  %1009 = vst [vmem:[#allocation5 + $0x250] sm:$0xff] %v881_v24  ;;  %1010 = vst [vmem:[#allocation5 + $0x258] sm:$0xff] %v882_v14  ;;  %v745_v51 = vmul.f32 %v1252_v50, %v1161_v48  ;;  %v746_v20 = vmul.f32 %v1253_v19, %v1161_v48  ;;  %v583_v0 = vadd.f32 1e-06, %v519_v18  ;;  %v425_v1 = vpop.xlane.xlu1 %424  ;;  %v1265_v50 = vld [vmem:[#allocation2 + $0x2d8] sm:$0xff] }
 0x102   :  { %1007 = vst [vmem:[#allocation5 + $0x240] sm:$0xff] %v879_v49  ;;  %1008 = vst [vmem:[#allocation5 + $0x248] sm:$0xff] %v880_v25  ;;  %v743_v37 = vmul.f32 %v1254_v36, %v1163_v35  ;;  %v744_v5 = vmul.f32 %v1255_v2, %v1163_v35  ;;  %1172 = vrsqrt.f32 %v584_v34  ;;  %v522_v42 = vmul.f32 0.00390625, %v425_v1  ;;  %v422_v58 = vpop.xlane.xlu0 %421  ;;  %v1264_v34 = vld [vmem:[#allocation2 + $0x2d0] sm:$0xff]  ;;  %v1267_v36 = vld [vmem:[#allocation2 + $0x2c8] sm:$0xff] }
 0x103   :  { %v885_v59 = vmul.f32 %v1533_v54, %v745_v51  ;;  %v886_v43 = vmul.f32 %v1535_v55, %v746_v20  ;;  %1174 = vrsqrt.f32 %v583_v0  ;;  %v521_v44 = vmul.f32 0.00390625, %v422_v58  ;;  %v1266_v0 = vld [vmem:[#allocation2 + $0x2c0] sm:$0xff] }
 0x104   :  { %v1165_v28 = vpop.eup %1164  ;;  %v883_v60 = vmul.f32 %v1533_v54, %v743_v37  ;;  %v884_v61 = vmul.f32 %v1535_v55, %v744_v5  ;;  %v586_v29 = vadd.f32 1e-06, %v522_v42 }
 0x105   :  { %v1167_v45 = vpop.eup %1166  ;;  %1013 = vst [vmem:[#allocation5 + $0x270] sm:$0xff] %v885_v59  ;;  %1014 = vst [vmem:[#allocation5 + $0x278] sm:$0xff] %v886_v43  ;;  %v749_v47 = vmul.f32 %v1256_v46, %v1165_v28  ;;  %v750_v31 = vmul.f32 %v1257_v30, %v1165_v28  ;;  %v585_v52 = vadd.f32 1e-06, %v521_v44  ;;  %v431_v53 = vpop.xlane.xlu1 %430  ;;  %v1269_v46 = vld [vmem:[#allocation2 + $0x2f8] sm:$0xff] }
 0x106   :  { %1011 = vst [vmem:[#allocation5 + $0x260] sm:$0xff] %v883_v60  ;;  %1012 = vst [vmem:[#allocation5 + $0x268] sm:$0xff] %v884_v61  ;;  %v747_v10 = vmul.f32 %v1258_v56, %v1167_v45  ;;  %v748_v7 = vmul.f32 %v1259_v11, %v1167_v45  ;;  %1176 = vrsqrt.f32 %v586_v29  ;;  %v524_v8 = vmul.f32 0.00390625, %v431_v53  ;;  %v428_v57 = vpop.xlane.xlu0 %427  ;;  %v1268_v29 = vld [vmem:[#allocation2 + $0x2f0] sm:$0xff]  ;;  %v1271_v56 = vld [vmem:[#allocation2 + $0x2e8] sm:$0xff] }
 0x107   :  { %v889_v15 = vmul.f32 %v1533_v54, %v749_v47  ;;  %v890_v16 = vmul.f32 %v1535_v55, %v750_v31  ;;  %1178 = vrsqrt.f32 %v585_v52  ;;  %v523_v62 = vmul.f32 0.00390625, %v428_v57  ;;  %v1270_v52 = vld [vmem:[#allocation2 + $0x2e0] sm:$0xff] }
 0x108   :  { %v1169_v63 = vpop.eup %1168  ;;  %v887_v12 = vmul.f32 %v1533_v54, %v747_v10  ;;  %v888_v38 = vmul.f32 %v1535_v55, %v748_v7  ;;  %v588_v39 = vadd.f32 1e-06, %v524_v8 }
 0x109   :  { %v1171_v13 = vpop.eup %1170  ;;  %1017 = vst [vmem:[#allocation5 + $0x290] sm:$0xff] %v889_v15  ;;  %1018 = vst [vmem:[#allocation5 + $0x298] sm:$0xff] %v890_v16  ;;  %v753_v4 = vmul.f32 %v1260_v3, %v1169_v63  ;;  %v754_v26 = vmul.f32 %v1261_v40, %v1169_v63  ;;  %v587_v27 = vadd.f32 1e-06, %v523_v62  ;;  %v437_v41 = vpop.xlane.xlu1 %436  ;;  %v1273_v3 = vld [vmem:[#allocation2 + $0x318] sm:$0xff] }
 0x10a   :  { %1015 = vst [vmem:[#allocation5 + $0x280] sm:$0xff] %v887_v12  ;;  %1016 = vst [vmem:[#allocation5 + $0x288] sm:$0xff] %v888_v38  ;;  %v751_v9 = vmul.f32 %v1262_v6, %v1171_v13  ;;  %v752_v33 = vmul.f32 %v1263_v32, %v1171_v13  ;;  %1180 = vrsqrt.f32 %v588_v39  ;;  %v526_v17 = vmul.f32 0.00390625, %v437_v41  ;;  %v434_v21 = vpop.xlane.xlu0 %433  ;;  %v1272_v39 = vld [vmem:[#allocation2 + $0x310] sm:$0xff]  ;;  %v1275_v6 = vld [vmem:[#allocation2 + $0x308] sm:$0xff] }
 0x10b   :  { %v893_v22 = vmul.f32 %v1533_v54, %v753_v4  ;;  %v894_v23 = vmul.f32 %v1535_v55, %v754_v26  ;;  %1182 = vrsqrt.f32 %v587_v27  ;;  %v525_v24 = vmul.f32 0.00390625, %v434_v21  ;;  %v1274_v27 = vld [vmem:[#allocation2 + $0x300] sm:$0xff] }
 0x10c   :  { %v1173_v14 = vpop.eup %1172  ;;  %v891_v18 = vmul.f32 %v1533_v54, %v751_v9  ;;  %v892_v48 = vmul.f32 %v1535_v55, %v752_v33  ;;  %v590_v49 = vadd.f32 1e-06, %v526_v17 }
 0x10d   :  { %v1175_v25 = vpop.eup %1174  ;;  %1021 = vst [vmem:[#allocation5 + $0x2b0] sm:$0xff] %v893_v22  ;;  %1022 = vst [vmem:[#allocation5 + $0x2b8] sm:$0xff] %v894_v23  ;;  %v757_v35 = vmul.f32 %v1264_v34, %v1173_v14  ;;  %v758_v51 = vmul.f32 %v1265_v50, %v1173_v14  ;;  %v589_v19 = vadd.f32 1e-06, %v525_v24  ;;  %v443_v20 = vpop.xlane.xlu1 %442  ;;  %v1277_v34 = vld [vmem:[#allocation2 + $0x338] sm:$0xff] }
 0x10e   :  { %1019 = vst [vmem:[#allocation5 + $0x2a0] sm:$0xff] %v891_v18  ;;  %1020 = vst [vmem:[#allocation5 + $0x2a8] sm:$0xff] %v892_v48  ;;  %v755_v1 = vmul.f32 %v1266_v0, %v1175_v25  ;;  %v756_v37 = vmul.f32 %v1267_v36, %v1175_v25  ;;  %1184 = vrsqrt.f32 %v590_v49  ;;  %v528_v2 = vmul.f32 0.00390625, %v443_v20  ;;  %v440_v5 = vpop.xlane.xlu0 %439  ;;  %v1276_v49 = vld [vmem:[#allocation2 + $0x330] sm:$0xff]  ;;  %v1279_v0 = vld [vmem:[#allocation2 + $0x328] sm:$0xff] }
 0x10f   :  { %v897_v42 = vmul.f32 %v1533_v54, %v757_v35  ;;  %v898_v58 = vmul.f32 %v1535_v55, %v758_v51  ;;  %1186 = vrsqrt.f32 %v589_v19  ;;  %v527_v59 = vmul.f32 0.00390625, %v440_v5  ;;  %v1278_v19 = vld [vmem:[#allocation2 + $0x320] sm:$0xff] }
 0x110   :  { %v1177_v43 = vpop.eup %1176  ;;  %v895_v44 = vmul.f32 %v1533_v54, %v755_v1  ;;  %v896_v28 = vmul.f32 %v1535_v55, %v756_v37  ;;  %v592_v60 = vadd.f32 1e-06, %v528_v2 }
 0x111   :  { %v1179_v61 = vpop.eup %1178  ;;  %1025 = vst [vmem:[#allocation5 + $0x2d0] sm:$0xff] %v897_v42  ;;  %1026 = vst [vmem:[#allocation5 + $0x2d8] sm:$0xff] %v898_v58  ;;  %v761_v45 = vmul.f32 %v1268_v29, %v1177_v43  ;;  %v762_v47 = vmul.f32 %v1269_v46, %v1177_v43  ;;  %v591_v30 = vadd.f32 1e-06, %v527_v59  ;;  %v449_v31 = vpop.xlane.xlu1 %448  ;;  %v1281_v29 = vld [vmem:[#allocation2 + $0x358] sm:$0xff] }
 0x112   :  { %1023 = vst [vmem:[#allocation5 + $0x2c0] sm:$0xff] %v895_v44  ;;  %1024 = vst [vmem:[#allocation5 + $0x2c8] sm:$0xff] %v896_v28  ;;  %v759_v53 = vmul.f32 %v1270_v52, %v1179_v61  ;;  %v760_v10 = vmul.f32 %v1271_v56, %v1179_v61  ;;  %1188 = vrsqrt.f32 %v592_v60  ;;  %v530_v11 = vmul.f32 0.00390625, %v449_v31  ;;  %v446_v7 = vpop.xlane.xlu0 %445  ;;  %v1280_v60 = vld [vmem:[#allocation2 + $0x350] sm:$0xff]  ;;  %v1283_v52 = vld [vmem:[#allocation2 + $0x348] sm:$0xff] }
 0x113   :  { %v901_v8 = vmul.f32 %v1533_v54, %v761_v45  ;;  %v902_v57 = vmul.f32 %v1535_v55, %v762_v47  ;;  %1190 = vrsqrt.f32 %v591_v30  ;;  %v529_v15 = vmul.f32 0.00390625, %v446_v7  ;;  %v1282_v30 = vld [vmem:[#allocation2 + $0x340] sm:$0xff] }
 0x114   :  { %v1181_v16 = vpop.eup %1180  ;;  %v899_v62 = vmul.f32 %v1533_v54, %v759_v53  ;;  %v900_v63 = vmul.f32 %v1535_v55, %v760_v10  ;;  %v594_v12 = vadd.f32 1e-06, %v530_v11 }
 0x115   :  { %v1183_v38 = vpop.eup %1182  ;;  %1029 = vst [vmem:[#allocation5 + $0x2f0] sm:$0xff] %v901_v8  ;;  %1030 = vst [vmem:[#allocation5 + $0x2f8] sm:$0xff] %v902_v57  ;;  %v765_v13 = vmul.f32 %v1272_v39, %v1181_v16  ;;  %v766_v4 = vmul.f32 %v1273_v3, %v1181_v16  ;;  %v593_v40 = vadd.f32 1e-06, %v529_v15  ;;  %v455_v26 = vpop.xlane.xlu1 %454  ;;  %v1285_v39 = vld [vmem:[#allocation2 + $0x378] sm:$0xff] }
 0x116   :  { %1027 = vst [vmem:[#allocation5 + $0x2e0] sm:$0xff] %v899_v62  ;;  %1028 = vst [vmem:[#allocation5 + $0x2e8] sm:$0xff] %v900_v63  ;;  %v763_v41 = vmul.f32 %v1274_v27, %v1183_v38  ;;  %v764_v9 = vmul.f32 %v1275_v6, %v1183_v38  ;;  %1192 = vrsqrt.f32 %v594_v12  ;;  %v532_v32 = vmul.f32 0.00390625, %v455_v26  ;;  %v452_v33 = vpop.xlane.xlu0 %451  ;;  %v1284_v12 = vld [vmem:[#allocation2 + $0x370] sm:$0xff]  ;;  %v1287_v27 = vld [vmem:[#allocation2 + $0x368] sm:$0xff] }
 0x117   :  { %v905_v17 = vmul.f32 %v1533_v54, %v765_v13  ;;  %v906_v21 = vmul.f32 %v1535_v55, %v766_v4  ;;  %1194 = vrsqrt.f32 %v593_v40  ;;  %v531_v22 = vmul.f32 0.00390625, %v452_v33  ;;  %v1286_v40 = vld [vmem:[#allocation2 + $0x360] sm:$0xff] }
 0x118   :  { %v1185_v23 = vpop.eup %1184  ;;  %v903_v24 = vmul.f32 %v1533_v54, %v763_v41  ;;  %v904_v14 = vmul.f32 %v1535_v55, %v764_v9  ;;  %v596_v18 = vadd.f32 1e-06, %v532_v32 }
 0x119   :  { %v1187_v48 = vpop.eup %1186  ;;  %1033 = vst [vmem:[#allocation5 + $0x310] sm:$0xff] %v905_v17  ;;  %1034 = vst [vmem:[#allocation5 + $0x318] sm:$0xff] %v906_v21  ;;  %v769_v25 = vmul.f32 %v1276_v49, %v1185_v23  ;;  %v770_v35 = vmul.f32 %v1277_v34, %v1185_v23  ;;  %v595_v50 = vadd.f32 1e-06, %v531_v22  ;;  %v461_v51 = vpop.xlane.xlu1 %460  ;;  %v1289_v49 = vld [vmem:[#allocation2 + $0x398] sm:$0xff] }
 0x11a   :  { %1031 = vst [vmem:[#allocation5 + $0x300] sm:$0xff] %v903_v24  ;;  %1032 = vst [vmem:[#allocation5 + $0x308] sm:$0xff] %v904_v14  ;;  %v767_v20 = vmul.f32 %v1278_v19, %v1187_v48  ;;  %v768_v1 = vmul.f32 %v1279_v0, %v1187_v48  ;;  %1196 = vrsqrt.f32 %v596_v18  ;;  %v534_v36 = vmul.f32 0.00390625, %v461_v51  ;;  %v458_v37 = vpop.xlane.xlu0 %457  ;;  %v1288_v18 = vld [vmem:[#allocation2 + $0x390] sm:$0xff]  ;;  %v1291_v51 = vld [vmem:[#allocation2 + $0x388] sm:$0xff] }
 0x11b   :  { %v909_v2 = vmul.f32 %v1533_v54, %v769_v25  ;;  %v910_v5 = vmul.f32 %v1535_v55, %v770_v35  ;;  %1198 = vrsqrt.f32 %v595_v50  ;;  %v533_v42 = vmul.f32 0.00390625, %v458_v37  ;;  %v1290_v35 = vld [vmem:[#allocation2 + $0x380] sm:$0xff] }
 0x11c   :  { %v1189_v58 = vpop.eup %1188  ;;  %v907_v59 = vmul.f32 %v1533_v54, %v767_v20  ;;  %v908_v43 = vmul.f32 %v1535_v55, %v768_v1  ;;  %v598_v44 = vadd.f32 1e-06, %v534_v36 }
 0x11d   :  { %v1191_v28 = vpop.eup %1190  ;;  %1037 = vst [vmem:[#allocation5 + $0x330] sm:$0xff] %v909_v2  ;;  %1038 = vst [vmem:[#allocation5 + $0x338] sm:$0xff] %v910_v5  ;;  %v773_v61 = vmul.f32 %v1280_v60, %v1189_v58  ;;  %v774_v45 = vmul.f32 %v1281_v29, %v1189_v58  ;;  %v597_v46 = vadd.f32 1e-06, %v533_v42  ;;  %v467_v47 = vpop.xlane.xlu1 %466  ;;  %v1292_v5 = vld [vmem:[#allocation2 + $0x3b0] sm:$0xff]  ;;  %v1293_v58 = vld [vmem:[#allocation2 + $0x3b8] sm:$0xff] }
 0x11e   :  { %1035 = vst [vmem:[#allocation5 + $0x320] sm:$0xff] %v907_v59  ;;  %1036 = vst [vmem:[#allocation5 + $0x328] sm:$0xff] %v908_v43  ;;  %v771_v31 = vmul.f32 %v1282_v30, %v1191_v28  ;;  %v772_v53 = vmul.f32 %v1283_v52, %v1191_v28  ;;  %1200 = vrsqrt.f32 %v598_v44  ;;  %v536_v56 = vmul.f32 0.00390625, %v467_v47  ;;  %v464_v10 = vpop.xlane.xlu0 %463  ;;  %v1294_v43 = vld [vmem:[#allocation2 + $0x3a0] sm:$0xff]  ;;  %v1295_v28 = vld [vmem:[#allocation2 + $0x3a8] sm:$0xff] }
 0x11f   :  { %v913_v11 = vmul.f32 %v1533_v54, %v773_v61  ;;  %v914_v7 = vmul.f32 %v1535_v55, %v774_v45  ;;  %1202 = vrsqrt.f32 %v597_v46  ;;  %v535_v8 = vmul.f32 0.00390625, %v464_v10  ;;  %v1298_v10 = vld [vmem:[#allocation2 + $0x3c0] sm:$0xff] }
 0x120   :  { %v1193_v57 = vpop.eup %1192  ;;  %v911_v15 = vmul.f32 %v1533_v54, %v771_v31  ;;  %v912_v16 = vmul.f32 %v1535_v55, %v772_v53  ;;  %v600_v62 = vadd.f32 1e-06, %v536_v56  ;;  %v1296_v31 = vld [vmem:[#allocation2 + $0x3d0] sm:$0xff]  ;;  %v1297_v53 = vld [vmem:[#allocation2 + $0x3d8] sm:$0xff] }
 0x121   :  { %v1195_v63 = vpop.eup %1194  ;;  %1041 = vst [vmem:[#allocation5 + $0x350] sm:$0xff] %v913_v11  ;;  %1042 = vst [vmem:[#allocation5 + $0x358] sm:$0xff] %v914_v7  ;;  %v777_v38 = vmul.f32 %v1284_v12, %v1193_v57  ;;  %v778_v13 = vmul.f32 %v1285_v39, %v1193_v57  ;;  %v599_v3 = vadd.f32 1e-06, %v535_v8  ;;  %v473_v4 = vpop.xlane.xlu1 %472  ;;  %v1299_v7 = vld [vmem:[#allocation2 + $0x3c8] sm:$0xff] }
 0x122   :  { %1039 = vst [vmem:[#allocation5 + $0x340] sm:$0xff] %v911_v15  ;;  %1040 = vst [vmem:[#allocation5 + $0x348] sm:$0xff] %v912_v16  ;;  %v775_v26 = vmul.f32 %v1286_v40, %v1195_v63  ;;  %v776_v41 = vmul.f32 %v1287_v27, %v1195_v63  ;;  %1204 = vrsqrt.f32 %v600_v62  ;;  %v538_v6 = vmul.f32 0.00390625, %v473_v4  ;;  %v470_v9 = vpop.xlane.xlu0 %469  ;;  %v1302_v4 = vld [vmem:[#allocation2 + $0x3e0] sm:$0xff] }
 0x123   :  { %v917_v32 = vmul.f32 %v1533_v54, %v777_v38  ;;  %v918_v33 = vmul.f32 %v1535_v55, %v778_v13  ;;  %1206 = vrsqrt.f32 %v599_v3  ;;  %v537_v17 = vmul.f32 0.00390625, %v470_v9  ;;  %v1300_v38 = vld [vmem:[#allocation2 + $0x3f0] sm:$0xff]  ;;  %v1301_v13 = vld [vmem:[#allocation2 + $0x3f8] sm:$0xff] }
 0x124   :  { %v1197_v21 = vpop.eup %1196  ;;  %v915_v22 = vmul.f32 %v1533_v54, %v775_v26  ;;  %v916_v23 = vmul.f32 %v1535_v55, %v776_v41  ;;  %v602_v24 = vadd.f32 1e-06, %v538_v6  ;;  %v1303_v26 = vld [vmem:[#allocation2 + $0x3e8] sm:$0xff] }
 0x125   :  { %v1199_v14 = vpop.eup %1198  ;;  %1045 = vst [vmem:[#allocation5 + $0x370] sm:$0xff] %v917_v32  ;;  %1046 = vst [vmem:[#allocation5 + $0x378] sm:$0xff] %v918_v33  ;;  %v781_v48 = vmul.f32 %v1288_v18, %v1197_v21  ;;  %v782_v25 = vmul.f32 %v1289_v49, %v1197_v21  ;;  %v601_v34 = vadd.f32 1e-06, %v537_v17 }
 0x126   :  { %1043 = vst [vmem:[#allocation5 + $0x360] sm:$0xff] %v915_v22  ;;  %1044 = vst [vmem:[#allocation5 + $0x368] sm:$0xff] %v916_v23  ;;  %v779_v50 = vmul.f32 %v1290_v35, %v1199_v14  ;;  %v780_v19 = vmul.f32 %v1291_v51, %v1199_v14  ;;  %1208 = vrsqrt.f32 %v602_v24 }
 0x127   :  { %v921_v20 = vmul.f32 %v1533_v54, %v781_v48  ;;  %v922_v0 = vmul.f32 %v1535_v55, %v782_v25  ;;  %1210 = vrsqrt.f32 %v601_v34 }
 0x128   :  { %v1201_v1 = vpop.eup %1200  ;;  %v919_v36 = vmul.f32 %v1533_v54, %v779_v50  ;;  %v920_v37 = vmul.f32 %v1535_v55, %v780_v19 }
 0x129   :  { %v1203_v2 = vpop.eup %1202  ;;  %1049 = vst [vmem:[#allocation5 + $0x390] sm:$0xff] %v921_v20  ;;  %1050 = vst [vmem:[#allocation5 + $0x398] sm:$0xff] %v922_v0  ;;  %v785_v42 = vmul.f32 %v1292_v5, %v1201_v1  ;;  %v786_v59 = vmul.f32 %v1293_v58, %v1201_v1 }
 0x12a   :  { %1047 = vst [vmem:[#allocation5 + $0x380] sm:$0xff] %v919_v36  ;;  %1048 = vst [vmem:[#allocation5 + $0x388] sm:$0xff] %v920_v37  ;;  %v783_v44 = vmul.f32 %v1294_v43, %v1203_v2  ;;  %v784_v60 = vmul.f32 %v1295_v28, %v1203_v2 }
 0x12b   :  { %v925_v61 = vmul.f32 %v1533_v54, %v785_v42  ;;  %v926_v29 = vmul.f32 %v1535_v55, %v786_v59 }
 0x12c   :  { %v1205_v45 = vpop.eup %1204  ;;  %v923_v46 = vmul.f32 %v1533_v54, %v783_v44  ;;  %v924_v47 = vmul.f32 %v1535_v55, %v784_v60 }
 0x12d   :  { %v1207_v30 = vpop.eup %1206  ;;  %1053 = vst [vmem:[#allocation5 + $0x3b0] sm:$0xff] %v925_v61  ;;  %1054 = vst [vmem:[#allocation5 + $0x3b8] sm:$0xff] %v926_v29  ;;  %v789_v52 = vmul.f32 %v1296_v31, %v1205_v45  ;;  %v790_v56 = vmul.f32 %v1297_v53, %v1205_v45 }
 0x12e   :  { %1051 = vst [vmem:[#allocation5 + $0x3a0] sm:$0xff] %v923_v46  ;;  %1052 = vst [vmem:[#allocation5 + $0x3a8] sm:$0xff] %v924_v47  ;;  %v787_v11 = vmul.f32 %v1298_v10, %v1207_v30  ;;  %v788_v8 = vmul.f32 %v1299_v7, %v1207_v30 }
 0x12f   :  { %v929_v57 = vmul.f32 %v1533_v54, %v789_v52  ;;  %v930_v15 = vmul.f32 %v1535_v55, %v790_v56 }
 0x130   :  { %v1209_v16 = vpop.eup %1208  ;;  %v927_v62 = vmul.f32 %v1533_v54, %v787_v11  ;;  %v928_v63 = vmul.f32 %v1535_v55, %v788_v8 }
 0x131   :  { %v1211_v12 = vpop.eup %1210  ;;  %1057 = vst [vmem:[#allocation5 + $0x3d0] sm:$0xff] %v929_v57  ;;  %1058 = vst [vmem:[#allocation5 + $0x3d8] sm:$0xff] %v930_v15  ;;  %v793_v39 = vmul.f32 %v1300_v38, %v1209_v16  ;;  %v794_v3 = vmul.f32 %v1301_v13, %v1209_v16 }
 0x132   :  { %1055 = vst [vmem:[#allocation5 + $0x3c0] sm:$0xff] %v927_v62  ;;  %1056 = vst [vmem:[#allocation5 + $0x3c8] sm:$0xff] %v928_v63  ;;  %v791_v40 = vmul.f32 %v1302_v4, %v1211_v12  ;;  %v792_v27 = vmul.f32 %v1303_v26, %v1211_v12 }
 0x133   :  { %v933_v41 = vmul.f32 %v1533_v54, %v793_v39  ;;  %v934_v6 = vmul.f32 %v1535_v55, %v794_v3 }
 0x134   :  { %v931_v9 = vmul.f32 %v1533_v54, %v791_v40  ;;  %v932_v32 = vmul.f32 %v1535_v55, %v792_v27 }
 0x135   :  { %1061 = vst [vmem:[#allocation5 + $0x3f0] sm:$0xff] %v933_v41  ;;  %1062 = vst [vmem:[#allocation5 + $0x3f8] sm:$0xff] %v934_v6 }
 0x136   :  { %1059 = vst [vmem:[#allocation5 + $0x3e0] sm:$0xff] %v931_v9  ;;  %1060 = vst [vmem:[#allocation5 + $0x3e8] sm:$0xff] %v932_v32 }
 0x137   :  { %1337 = shalt.err (!%p1334_p12)
}
 0x138   :  { %s1338_s28 = scalar_lea.hbm %s1718_s2, 16384 }
 0x139   :  { %p1339_p13 = scmp.ne.s32.totalorder %s1718_s2, %s1338_s28  ;;  %p1342_p0 = scmp.lt.u32.totalorder %s1338_s28, %s1718_s2 }
 0x13b   :  { %p1344_p1 = pnand %p1342_p0, %p1339_p13 }
 0x13d   :  { %1347 = shalt.err (!%p1344_p1)
}
 0x13e   :  { %1074 = dma.vmem_to_hbm [thread:$0]  %s1069_s24, 16384, %s1718_s2, [#allocation4], %s1353_s19, %s1353_s19, %s1354_s20  }
 0x13f   :  { %1350 = dma.done.wait [#allocation4], 16384  }
 0x140   :  { %1351 = vsyncadd [#allocation4], 4294950912 }
 0x141   :  { %1078 = vsyncpa [#allocation3], 1 }
 0x142   :  { %1079 = vsyncpa [#allocation4], 1 }

</bundles_post_ra>
